<compile_context>
chip_gen: v6e
topology: v6e:2x2x1
jax: 0.10.0
libtpu: 0.0.40
codegen_flags: <defaults>
</compile_context>

<pallas_src>
import jax
import jax.numpy as jnp
from jax import lax
from jax.experimental import pallas as pl
from jax.experimental.pallas import tpu as pltpu


def _round_up(x, m):
    return ((x + m - 1) // m) * m


def lstm_fc_kernel(blkmax_ref, lens_ref, gx_ref, w_hh_ref, w_fc_ref, b_fc_ref,
                   out_ref, h_scr, c_scr):
    b_idx = pl.program_id(0)            # batch block ("parallel")
    c_idx = pl.program_id(1)            # time-chunk index (innermost, "arbitrary")
    T = gx_ref.shape[0]                 # timesteps in this chunk (static)
    Hp = h_scr.shape[1]                 # padded hidden (multiple of 128 -> lane-aligned gates)
    t0 = c_idx * T                      # global timestep offset of this chunk

    @pl.when(c_idx == 0)
    def _():
        h_scr[...] = jnp.zeros_like(h_scr)
        c_scr[...] = jnp.zeros_like(c_scr)

    # Early exit: skip the whole chunk once every sequence in this batch block has finished
    # (blkmax is scalar-prefetched into SMEM).  State simply stays frozen in VMEM scratch.
    @pl.when(t0 < blkmax_ref[b_idx])
    def _():
        # Hoisted loop invariants (read once per chunk, not per step).
        lens = lens_ref[...]            # [B, 1] int32
        w_hh = w_hh_ref[...]            # [Hp, 4*Hp] bf16

        def step(t, carry):
            h_prev, c_prev = carry                      # [B, Hp] f32
            gx = gx_ref[t].astype(jnp.float32)          # [B, 4*Hp], stored bf16
            gates = gx + jnp.dot(h_prev.astype(w_hh.dtype), w_hh,
                                 preferred_element_type=jnp.float32)
            # PyTorch gate order (i, f, g, o); slices are 128-lane aligned.
            i_g = jax.nn.sigmoid(gates[:, 0 * Hp:1 * Hp])
            f_g = jax.nn.sigmoid(gates[:, 1 * Hp:2 * Hp])
            g_g = jnp.tanh(gates[:, 2 * Hp:3 * Hp])
            o_g = jax.nn.sigmoid(gates[:, 3 * Hp:4 * Hp])
            c_new = f_g * c_prev + i_g * g_g
            h_new = o_g * jnp.tanh(c_new)
            # packed-sequence masking: freeze state once t >= length
            active = (t0 + t) < lens                    # [B, 1] bool
            return (jnp.where(active, h_new, h_prev),
                    jnp.where(active, c_new, c_prev))

        unroll = True if T <= 16 else 8                 # partial unroll for long chunks
        h, c = lax.fori_loop(0, T, step, (h_scr[...], c_scr[...]), unroll=unroll)
        h_scr[...] = h
        c_scr[...] = c

    @pl.when(c_idx == pl.num_programs(1) - 1)
    def _():
        # Dropout (eval mode) == identity; FC on final hidden.  Lane-dense [B, O_pad] store.
        out_ref[...] = (jnp.dot(h_scr[...].astype(w_fc_ref.dtype), w_fc_ref[...],
                                preferred_element_type=jnp.float32)
                        + b_fc_ref[...])


def rnn_forward(text, text_length, params, *, t_chunk=32, b_block=64):
    """text: [S, B] int32 (time-major), text_length: [B] int32. Returns [B * output_dim] f32."""
    emb_table = params["embedding"]             # [V, E] bf16
    w_ih_t = params["w_ih_t"]                   # [E, 4*Hp] bf16 (gate-block padded)
    w_hh_t = params["w_hh_t"]                   # [Hp, 4*Hp] bf16
    b_gates = params["b_gates"]                 # [1, 4*Hp] f32 (b_ih + b_hh, padded)
    w_fc_t = params["w_fc_t"]                   # [Hp, Op] bf16
    b_fc = params["b_fc"]                       # [1, Op] f32
    O = params["output_dim"]

    S, B = text.shape
    E = emb_table.shape[1]
    Hp, G = w_hh_t.shape                        # G = 4 * Hp
    Op = w_fc_t.shape[1]

    # --- Tile-size selection (review: bigger blocks, capped to the problem size) ---
    t_chunk = max(1, min(t_chunk, S))
    b_block = _round_up(min(b_block, _round_up(B, 8)), 8)
    B_pad = _round_up(B, b_block)
    # v7x has two TensorCores: keep >=2 "parallel" batch blocks when the batch allows it.
    if B_pad // b_block == 1 and b_block >= 32 and (b_block // 2) % 8 == 0:
        b_block //= 2
    n_bblocks = B_pad // b_block
    S_pad = pl.cdiv(S, t_chunk) * t_chunk

    text_p = jnp.zeros((S_pad, B_pad), jnp.int32).at[:S, :B].set(text.astype(jnp.int32))
    lens_p = jnp.zeros((B_pad, 1), jnp.int32).at[:B, 0].set(text_length.astype(jnp.int32))
    # Per-batch-block max length (scalar prefetch -> SMEM): enables chunk-level early exit.
    blk_max = lens_p[:, 0].reshape(n_bblocks, b_block).max(axis=1).astype(jnp.int32)

    # --- Glue: embedding gather + hoisted input projection (one big batched matmul) ---
    embedded = emb_table[text_p]                                        # [S_pad, B_pad, E] bf16
    gx = (jnp.dot(embedded.reshape(S_pad * B_pad, E), w_ih_t,
                  preferred_element_type=jnp.float32)
          + b_gates).astype(jnp.bfloat16).reshape(S_pad, B_pad, G)      # bf16 streamed operand

    grid = (n_bblocks, S_pad // t_chunk)

    out = pl.pallas_call(
        lstm_fc_kernel,
        out_shape=jax.ShapeDtypeStruct((B_pad, Op), jnp.float32),
        grid_spec=pltpu.PrefetchScalarGridSpec(
            num_scalar_prefetch=1,                                           # blk_max -> SMEM
            grid=grid,
            in_specs=[
                pl.BlockSpec((b_block, 1), lambda b, c, bm: (b, 0)),             # lens
                pl.BlockSpec((t_chunk, b_block, G), lambda b, c, bm: (c, b, 0)), # gx (bf16)
                pl.BlockSpec((Hp, G), lambda b, c, bm: (0, 0)),                  # W_hh^T (resident)
                pl.BlockSpec((Hp, Op), lambda b, c, bm: (0, 0)),                 # W_fc^T (resident)
                pl.BlockSpec((1, Op), lambda b, c, bm: (0, 0)),                  # b_fc
            ],
            out_specs=pl.BlockSpec((b_block, Op), lambda b, c, bm: (b, 0)),
            scratch_shapes=[
                pltpu.VMEM((b_block, Hp), jnp.float32),                          # h
                pltpu.VMEM((b_block, Hp), jnp.float32),                          # c
            ],
        ),
        compiler_params=pltpu.CompilerParams(
            dimension_semantics=("parallel", "arbitrary"),                       # (batch, time)
            vmem_limit_bytes=64 * 1024 * 1024),
    )(blk_max, lens_p, gx, w_hh_t, w_fc_t, b_fc)

    return out[:B, :O].reshape(-1)              # .view(-1)


def init_params(key, input_dim, embedding_dim, hidden_dim, output_dim,
                compute_dtype=jnp.bfloat16):
    """PyTorch-style init, then re-laid out: gates lane-aligned to H_pad=128, FC padded to 128."""
    H = hidden_dim
    O = output_dim
    Hp = _round_up(H, 128)
    Op = _round_up(O, 128)

    k = jax.random.split(key, 7)
    s = 1.0 / (H ** 0.5)
    emb = jax.random.normal(k[0], (input_dim, embedding_dim), jnp.float32)
    w_ih = jax.random.uniform(k[1], (4 * H, embedding_dim), jnp.float32, -s, s)
    w_hh = jax.random.uniform(k[2], (4 * H, H), jnp.float32, -s, s)
    b_ih = jax.random.uniform(k[3], (4 * H,), jnp.float32, -s, s)
    b_hh = jax.random.uniform(k[4], (4 * H,), jnp.float32, -s, s)
    w_fc = jax.random.uniform(k[5], (O, H), jnp.float32, -s, s)
    b_fc = jax.random.uniform(k[6], (O,), jnp.float32, -s, s)

    def pad_gate_cols(w):   # [..., 4*H] -> [..., 4*Hp], each gate block zero-padded
        w4 = w.reshape(w.shape[:-1] + (4, H))
        pad = [(0, 0)] * (w4.ndim - 1) + [(0, Hp - H)]
        return jnp.pad(w4, pad).reshape(w.shape[:-1] + (4 * Hp,))

    w_ih_t = pad_gate_cols(w_ih.T)                                   # [E, 4*Hp]
    w_hh_t = jnp.pad(pad_gate_cols(w_hh.T), ((0, Hp - H), (0, 0)))   # [Hp, 4*Hp]
    b_gates = pad_gate_cols((b_ih + b_hh).reshape(1, 4 * H))         # [1, 4*Hp]
    w_fc_t = jnp.pad(w_fc.T, ((0, Hp - H), (0, Op - O)))             # [Hp, Op]
    b_fc_p = jnp.pad(b_fc.reshape(1, O), ((0, 0), (0, Op - O)))      # [1, Op]

    return {
        "embedding": emb.astype(compute_dtype),
        "w_ih_t": w_ih_t.astype(compute_dtype),
        "w_hh_t": w_hh_t.astype(compute_dtype),
        "b_gates": b_gates,                      # f32
        "w_fc_t": w_fc_t.astype(compute_dtype),
        "b_fc": b_fc_p,                          # f32
        "output_dim": O,
    }


def rnn_reference(text, text_length, params):
    """Pure-JAX reference (same quantized params / same compute path) for validation."""
    emb_table = params["embedding"]
    cdt = params["w_hh_t"].dtype
    w_ih_t = params["w_ih_t"].astype(jnp.float32)
    w_hh_t = params["w_hh_t"].astype(jnp.float32)
    b_g = params["b_gates"]
    w_fc_t = params["w_fc_t"].astype(jnp.float32)
    b_fc = params["b_fc"]
    O = params["output_dim"]
    Hp = w_hh_t.shape[0]
    S, B = text.shape

    x = emb_table[text].astype(jnp.float32)            # [S, B, E]
    lens = text_length.astype(jnp.int32)
    h = jnp.zeros((B, Hp), jnp.float32)
    c = jnp.zeros((B, Hp), jnp.float32)
    for t in range(S):
        gx = (x[t] @ w_ih_t + b_g).astype(cdt).astype(jnp.float32)   # bf16-stored gx
        g = gx + h.astype(cdt).astype(jnp.float32) @ w_hh_t
        i = jax.nn.sigmoid(g[:, 0 * Hp:1 * Hp])
        f = jax.nn.sigmoid(g[:, 1 * Hp:2 * Hp])
        gg = jnp.tanh(g[:, 2 * Hp:3 * Hp])
        o = jax.nn.sigmoid(g[:, 3 * Hp:4 * Hp])
        c_new = f * c + i * gg
        h_new = o * jnp.tanh(c_new)
        act = (t < lens)[:, None]
        h = jnp.where(act, h_new, h)
        c = jnp.where(act, c_new, c)
    out = h.astype(cdt).astype(jnp.float32) @ w_fc_t + b_fc
    return out[:, :O].reshape(-1)


if __name__ == "__main__":
    input_dim, embedding_dim, hidden_dim, output_dim = 50, 32, 32, 1
    seq_len, batch = 8, 4

    key = jax.random.PRNGKey(0)
    pkey, tkey = jax.random.split(key)
    params = init_params(pkey, input_dim, embedding_dim, hidden_dim, output_dim)

    text = jax.random.randint(tkey, (seq_len, batch), 0, input_dim, dtype=jnp.int32)
    text_length = jnp.array([8, 6, 5, 3], dtype=jnp.int32)   # sorted desc (pack_padded_sequence)

    out = rnn_forward(text, text_length, params)
    jax.block_until_ready(out)
    assert out.shape == (batch * output_dim,)

    ref = rnn_reference(text, text_length, params)
    assert jnp.allclose(out, ref, atol=2e-3, rtol=2e-3), (out, ref)

    print("KERNEL_OK")
</pallas_src>

<mosaic_0001>
module attributes {stable_mosaic.version = 11 : i64} {
  func.func @lstm_fc_kernel(%arg0: i32, %arg1: i32, %arg2: memref<1xi32, #tpu.memory_space<smem>>, %arg3: memref<8x1xi32, #tpu.memory_space<vmem>>, %arg4: memref<8x8x512xbf16, #tpu.memory_space<vmem>>, %arg5: memref<128x512xbf16, #tpu.memory_space<vmem>>, %arg6: memref<128x128xbf16, #tpu.memory_space<vmem>>, %arg7: memref<1x128xf32, #tpu.memory_space<vmem>>, %arg8: memref<8x128xf32, #tpu.memory_space<vmem>>, %arg9: memref<8x128xf32, #tpu.memory_space<vmem>>, %arg10: memref<8x128xf32, #tpu.memory_space<vmem>>) attributes {dimension_semantics = [#tpu.dimension_semantics<parallel>, #tpu.dimension_semantics<arbitrary>], iteration_bounds = array<i64: 1, 1>, scalar_prefetch = 1 : i64, scratch_operands = 2 : i64, tpu.core_type = #tpu.core_type<tc>, window_params = [{transform_indices = @transform_0, window_bounds = array<i64: 8, 1>}, {transform_indices = @transform_1, window_bounds = array<i64: 8, 8, 512>}, {pipeline_mode = #tpu.pipeline_mode<synchronous>, transform_indices = @transform_2, window_bounds = array<i64: 128, 512>}, {pipeline_mode = #tpu.pipeline_mode<synchronous>, transform_indices = @transform_3, window_bounds = array<i64: 128, 128>}, {pipeline_mode = #tpu.pipeline_mode<synchronous>, transform_indices = @transform_4, window_bounds = array<i64: 1, 128>}, {transform_indices = @transform_5, window_bounds = array<i64: 8, 128>}]} {
    %c8_i32 = arith.constant 8 : i32
    %0 = arith.muli %arg1, %c8_i32 : i32
    %c0_i32 = arith.constant 0 : i32
    %1 = arith.cmpi eq, %arg1, %c0_i32 : i32
    %2 = arith.extui %1 : i1 to i32
    %c0_i32_0 = arith.constant 0 : i32
    %3 = arith.cmpi ne, %2, %c0_i32_0 : i32
    scf.if %3 {
      %cst = arith.constant 0.000000e+00 : f32
      %12 = vector.broadcast %cst : f32 to vector<8x128xf32>
      %c0 = arith.constant 0 : index
      %c0_4 = arith.constant 0 : index
      %13 = vector.load %arg9[%c0, %c0_4] : memref<8x128xf32, #tpu.memory_space<vmem>>, vector<8x128xf32>
      tpu.vector_store %arg9[%c0, %c0_4], %12 {strides = array<i32>} : memref<8x128xf32, #tpu.memory_space<vmem>>, vector<8x128xf32>,
      %cst_5 = arith.constant 0.000000e+00 : f32
      %14 = vector.broadcast %cst_5 : f32 to vector<8x128xf32>
      %c0_6 = arith.constant 0 : index
      %c0_7 = arith.constant 0 : index
      %15 = vector.load %arg10[%c0_6, %c0_7] : memref<8x128xf32, #tpu.memory_space<vmem>>, vector<8x128xf32>
      tpu.vector_store %arg10[%c0_6, %c0_7], %14 {strides = array<i32>} : memref<8x128xf32, #tpu.memory_space<vmem>>, vector<8x128xf32>,
    } else {
    }
    %4 = arith.index_cast %arg0 : i32 to index
    %5 = memref.load %arg2[%4] : memref<1xi32, #tpu.memory_space<smem>>
    %6 = arith.cmpi slt, %0, %5 : i32
    %7 = arith.extui %6 : i1 to i32
    %c0_i32_1 = arith.constant 0 : i32
    %8 = arith.cmpi ne, %7, %c0_i32_1 : i32
    scf.if %8 {
      %c0 = arith.constant 0 : index
      %c0_4 = arith.constant 0 : index
      %12 = vector.load %arg3[%c0, %c0_4] : memref<8x1xi32, #tpu.memory_space<vmem>>, vector<8x1xi32>
      %c0_5 = arith.constant 0 : index
      %c0_6 = arith.constant 0 : index
      %13 = vector.load %arg5[%c0_5, %c0_6] : memref<128x512xbf16, #tpu.memory_space<vmem>>, vector<128x512xbf16>
      %c0_7 = arith.constant 0 : index
      %c0_8 = arith.constant 0 : index
      %14 = vector.load %arg9[%c0_7, %c0_8] : memref<8x128xf32, #tpu.memory_space<vmem>>, vector<8x128xf32>
      %c0_9 = arith.constant 0 : index
      %c0_10 = arith.constant 0 : index
      %15 = vector.load %arg10[%c0_9, %c0_10] : memref<8x128xf32, #tpu.memory_space<vmem>>, vector<8x128xf32>
      %c0_i32_11 = arith.constant 0 : i32
      %16 = arith.index_cast %c0_i32_11 : i32 to index
      %c0_12 = arith.constant 0 : index
      %c0_13 = arith.constant 0 : index
      %17 = vector.load %arg4[%16, %c0_12, %c0_13] : memref<8x8x512xbf16, #tpu.memory_space<vmem>>, vector<1x8x512xbf16>
      %18 = vector.shape_cast %17 : vector<1x8x512xbf16> to vector<8x512xbf16>
      %19 = arith.extf %18 : vector<8x512xbf16> to vector<8x512xf32>
      %20 = arith.truncf %14 : vector<8x128xf32> to vector<8x128xbf16>
      %cst = arith.constant dense<0.000000e+00> : vector<8x512xf32>
      %21 = tpu.matmul %20, %13, %cst {dimension_numbers = #tpu.dot_dimension_numbers<[1], [0], [0], [1], [0, 0, 1, 1], [], []>} : vector<8x128xbf16>, vector<128x512xbf16>, vector<8x512xf32> -> vector<8x512xf32>
      %22 = arith.addf %19, %21 : vector<8x512xf32>
      %23 = vector.extract_strided_slice %22 {offsets = [0, 0], sizes = [8, 128], strides = [1, 1]} : vector<8x512xf32> to vector<8x128xf32>
      %24 = arith.negf %23 : vector<8x128xf32>
      %25 = math.exp %24 : vector<8x128xf32>
      %cst_14 = arith.constant 1.000000e+00 : f32
      %26 = vector.broadcast %cst_14 : f32 to vector<8x128xf32>
      %27 = arith.addf %26, %25 : vector<8x128xf32>
      %28 = arith.divf %26, %27 : vector<8x128xf32>
      %29 = vector.extract_strided_slice %22 {offsets = [0, 128], sizes = [8, 128], strides = [1, 1]} : vector<8x512xf32> to vector<8x128xf32>
      %30 = arith.negf %29 : vector<8x128xf32>
      %31 = math.exp %30 : vector<8x128xf32>
      %cst_15 = arith.constant 1.000000e+00 : f32
      %32 = vector.broadcast %cst_15 : f32 to vector<8x128xf32>
      %33 = arith.addf %32, %31 : vector<8x128xf32>
      %34 = arith.divf %32, %33 : vector<8x128xf32>
      %35 = vector.extract_strided_slice %22 {offsets = [0, 256], sizes = [8, 128], strides = [1, 1]} : vector<8x512xf32> to vector<8x128xf32>
      %36 = math.tanh %35 : vector<8x128xf32>
      %37 = vector.extract_strided_slice %22 {offsets = [0, 384], sizes = [8, 128], strides = [1, 1]} : vector<8x512xf32> to vector<8x128xf32>
      %38 = arith.negf %37 : vector<8x128xf32>
      %39 = math.exp %38 : vector<8x128xf32>
      %cst_16 = arith.constant 1.000000e+00 : f32
      %40 = vector.broadcast %cst_16 : f32 to vector<8x128xf32>
      %41 = arith.addf %40, %39 : vector<8x128xf32>
      %42 = arith.divf %40, %41 : vector<8x128xf32>
      %43 = arith.mulf %34, %15 : vector<8x128xf32>
      %44 = arith.mulf %28, %36 : vector<8x128xf32>
      %45 = arith.addf %43, %44 : vector<8x128xf32>
      %46 = math.tanh %45 : vector<8x128xf32>
      %47 = arith.mulf %42, %46 : vector<8x128xf32>
      %48 = arith.addi %0, %c0_i32_11 : i32
      %49 = vector.broadcast %48 : i32 to vector<8x1xi32>
      %50 = arith.cmpi slt, %49, %12 : vector<8x1xi32>
      %51 = vector.shape_cast %50 : vector<8x1xi1> to vector<8x1xi1>
      %52 = vector.broadcast %51 : vector<8x1xi1> to vector<8x128xi1>
      %53 = arith.select %52, %47, %14 : vector<8x128xi1>, vector<8x128xf32>
      %54 = vector.shape_cast %50 : vector<8x1xi1> to vector<8x1xi1>
      %55 = vector.broadcast %54 : vector<8x1xi1> to vector<8x128xi1>
      %56 = arith.select %55, %45, %15 : vector<8x128xi1>, vector<8x128xf32>
      %c1_i32 = arith.constant 1 : i32
      %57 = arith.index_cast %c1_i32 : i32 to index
      %c0_17 = arith.constant 0 : index
      %c0_18 = arith.constant 0 : index
      %58 = vector.load %arg4[%57, %c0_17, %c0_18] : memref<8x8x512xbf16, #tpu.memory_space<vmem>>, vector<1x8x512xbf16>
      %59 = vector.shape_cast %58 : vector<1x8x512xbf16> to vector<8x512xbf16>
      %60 = arith.extf %59 : vector<8x512xbf16> to vector<8x512xf32>
      %61 = arith.truncf %53 : vector<8x128xf32> to vector<8x128xbf16>
      %cst_19 = arith.constant dense<0.000000e+00> : vector<8x512xf32>
      %62 = tpu.matmul %61, %13, %cst_19 {dimension_numbers = #tpu.dot_dimension_numbers<[1], [0], [0], [1], [0, 0, 1, 1], [], []>} : vector<8x128xbf16>, vector<128x512xbf16>, vector<8x512xf32> -> vector<8x512xf32>
      %63 = arith.addf %60, %62 : vector<8x512xf32>
      %64 = vector.extract_strided_slice %63 {offsets = [0, 0], sizes = [8, 128], strides = [1, 1]} : vector<8x512xf32> to vector<8x128xf32>
      %65 = arith.negf %64 : vector<8x128xf32>
      %66 = math.exp %65 : vector<8x128xf32>
      %cst_20 = arith.constant 1.000000e+00 : f32
      %67 = vector.broadcast %cst_20 : f32 to vector<8x128xf32>
      %68 = arith.addf %67, %66 : vector<8x128xf32>
      %69 = arith.divf %67, %68 : vector<8x128xf32>
      %70 = vector.extract_strided_slice %63 {offsets = [0, 128], sizes = [8, 128], strides = [1, 1]} : vector<8x512xf32> to vector<8x128xf32>
      %71 = arith.negf %70 : vector<8x128xf32>
      %72 = math.exp %71 : vector<8x128xf32>
      %cst_21 = arith.constant 1.000000e+00 : f32
      %73 = vector.broadcast %cst_21 : f32 to vector<8x128xf32>
      %74 = arith.addf %73, %72 : vector<8x128xf32>
      %75 = arith.divf %73, %74 : vector<8x128xf32>
      %76 = vector.extract_strided_slice %63 {offsets = [0, 256], sizes = [8, 128], strides = [1, 1]} : vector<8x512xf32> to vector<8x128xf32>
      %77 = math.tanh %76 : vector<8x128xf32>
      %78 = vector.extract_strided_slice %63 {offsets = [0, 384], sizes = [8, 128], strides = [1, 1]} : vector<8x512xf32> to vector<8x128xf32>
      %79 = arith.negf %78 : vector<8x128xf32>
      %80 = math.exp %79 : vector<8x128xf32>
      %cst_22 = arith.constant 1.000000e+00 : f32
      %81 = vector.broadcast %cst_22 : f32 to vector<8x128xf32>
      %82 = arith.addf %81, %80 : vector<8x128xf32>
      %83 = arith.divf %81, %82 : vector<8x128xf32>
      %84 = arith.mulf %75, %56 : vector<8x128xf32>
      %85 = arith.mulf %69, %77 : vector<8x128xf32>
      %86 = arith.addf %84, %85 : vector<8x128xf32>
      %87 = math.tanh %86 : vector<8x128xf32>
      %88 = arith.mulf %83, %87 : vector<8x128xf32>
      %89 = arith.addi %0, %c1_i32 : i32
      %90 = vector.broadcast %89 : i32 to vector<8x1xi32>
      %91 = arith.cmpi slt, %90, %12 : vector<8x1xi32>
      %92 = vector.shape_cast %91 : vector<8x1xi1> to vector<8x1xi1>
      %93 = vector.broadcast %92 : vector<8x1xi1> to vector<8x128xi1>
      %94 = arith.select %93, %88, %53 : vector<8x128xi1>, vector<8x128xf32>
      %95 = vector.shape_cast %91 : vector<8x1xi1> to vector<8x1xi1>
      %96 = vector.broadcast %95 : vector<8x1xi1> to vector<8x128xi1>
      %97 = arith.select %96, %86, %56 : vector<8x128xi1>, vector<8x128xf32>
      %c2_i32 = arith.constant 2 : i32
      %98 = arith.index_cast %c2_i32 : i32 to index
      %c0_23 = arith.constant 0 : index
      %c0_24 = arith.constant 0 : index
      %99 = vector.load %arg4[%98, %c0_23, %c0_24] : memref<8x8x512xbf16, #tpu.memory_space<vmem>>, vector<1x8x512xbf16>
      %100 = vector.shape_cast %99 : vector<1x8x512xbf16> to vector<8x512xbf16>
      %101 = arith.extf %100 : vector<8x512xbf16> to vector<8x512xf32>
      %102 = arith.truncf %94 : vector<8x128xf32> to vector<8x128xbf16>
      %cst_25 = arith.constant dense<0.000000e+00> : vector<8x512xf32>
      %103 = tpu.matmul %102, %13, %cst_25 {dimension_numbers = #tpu.dot_dimension_numbers<[1], [0], [0], [1], [0, 0, 1, 1], [], []>} : vector<8x128xbf16>, vector<128x512xbf16>, vector<8x512xf32> -> vector<8x512xf32>
      %104 = arith.addf %101, %103 : vector<8x512xf32>
      %105 = vector.extract_strided_slice %104 {offsets = [0, 0], sizes = [8, 128], strides = [1, 1]} : vector<8x512xf32> to vector<8x128xf32>
      %106 = arith.negf %105 : vector<8x128xf32>
      %107 = math.exp %106 : vector<8x128xf32>
      %cst_26 = arith.constant 1.000000e+00 : f32
      %108 = vector.broadcast %cst_26 : f32 to vector<8x128xf32>
      %109 = arith.addf %108, %107 : vector<8x128xf32>
      %110 = arith.divf %108, %109 : vector<8x128xf32>
      %111 = vector.extract_strided_slice %104 {offsets = [0, 128], sizes = [8, 128], strides = [1, 1]} : vector<8x512xf32> to vector<8x128xf32>
      %112 = arith.negf %111 : vector<8x128xf32>
      %113 = math.exp %112 : vector<8x128xf32>
      %cst_27 = arith.constant 1.000000e+00 : f32
      %114 = vector.broadcast %cst_27 : f32 to vector<8x128xf32>
      %115 = arith.addf %114, %113 : vector<8x128xf32>
      %116 = arith.divf %114, %115 : vector<8x128xf32>
      %117 = vector.extract_strided_slice %104 {offsets = [0, 256], sizes = [8, 128], strides = [1, 1]} : vector<8x512xf32> to vector<8x128xf32>
      %118 = math.tanh %117 : vector<8x128xf32>
      %119 = vector.extract_strided_slice %104 {offsets = [0, 384], sizes = [8, 128], strides = [1, 1]} : vector<8x512xf32> to vector<8x128xf32>
      %120 = arith.negf %119 : vector<8x128xf32>
      %121 = math.exp %120 : vector<8x128xf32>
      %cst_28 = arith.constant 1.000000e+00 : f32
      %122 = vector.broadcast %cst_28 : f32 to vector<8x128xf32>
      %123 = arith.addf %122, %121 : vector<8x128xf32>
      %124 = arith.divf %122, %123 : vector<8x128xf32>
      %125 = arith.mulf %116, %97 : vector<8x128xf32>
      %126 = arith.mulf %110, %118 : vector<8x128xf32>
      %127 = arith.addf %125, %126 : vector<8x128xf32>
      %128 = math.tanh %127 : vector<8x128xf32>
      %129 = arith.mulf %124, %128 : vector<8x128xf32>
      %130 = arith.addi %0, %c2_i32 : i32
      %131 = vector.broadcast %130 : i32 to vector<8x1xi32>
      %132 = arith.cmpi slt, %131, %12 : vector<8x1xi32>
      %133 = vector.shape_cast %132 : vector<8x1xi1> to vector<8x1xi1>
      %134 = vector.broadcast %133 : vector<8x1xi1> to vector<8x128xi1>
      %135 = arith.select %134, %129, %94 : vector<8x128xi1>, vector<8x128xf32>
      %136 = vector.shape_cast %132 : vector<8x1xi1> to vector<8x1xi1>
      %137 = vector.broadcast %136 : vector<8x1xi1> to vector<8x128xi1>
      %138 = arith.select %137, %127, %97 : vector<8x128xi1>, vector<8x128xf32>
      %c3_i32 = arith.constant 3 : i32
      %139 = arith.index_cast %c3_i32 : i32 to index
      %c0_29 = arith.constant 0 : index
      %c0_30 = arith.constant 0 : index
      %140 = vector.load %arg4[%139, %c0_29, %c0_30] : memref<8x8x512xbf16, #tpu.memory_space<vmem>>, vector<1x8x512xbf16>
      %141 = vector.shape_cast %140 : vector<1x8x512xbf16> to vector<8x512xbf16>
      %142 = arith.extf %141 : vector<8x512xbf16> to vector<8x512xf32>
      %143 = arith.truncf %135 : vector<8x128xf32> to vector<8x128xbf16>
      %cst_31 = arith.constant dense<0.000000e+00> : vector<8x512xf32>
      %144 = tpu.matmul %143, %13, %cst_31 {dimension_numbers = #tpu.dot_dimension_numbers<[1], [0], [0], [1], [0, 0, 1, 1], [], []>} : vector<8x128xbf16>, vector<128x512xbf16>, vector<8x512xf32> -> vector<8x512xf32>
      %145 = arith.addf %142, %144 : vector<8x512xf32>
      %146 = vector.extract_strided_slice %145 {offsets = [0, 0], sizes = [8, 128], strides = [1, 1]} : vector<8x512xf32> to vector<8x128xf32>
      %147 = arith.negf %146 : vector<8x128xf32>
      %148 = math.exp %147 : vector<8x128xf32>
      %cst_32 = arith.constant 1.000000e+00 : f32
      %149 = vector.broadcast %cst_32 : f32 to vector<8x128xf32>
      %150 = arith.addf %149, %148 : vector<8x128xf32>
      %151 = arith.divf %149, %150 : vector<8x128xf32>
      %152 = vector.extract_strided_slice %145 {offsets = [0, 128], sizes = [8, 128], strides = [1, 1]} : vector<8x512xf32> to vector<8x128xf32>
      %153 = arith.negf %152 : vector<8x128xf32>
      %154 = math.exp %153 : vector<8x128xf32>
      %cst_33 = arith.constant 1.000000e+00 : f32
      %155 = vector.broadcast %cst_33 : f32 to vector<8x128xf32>
      %156 = arith.addf %155, %154 : vector<8x128xf32>
      %157 = arith.divf %155, %156 : vector<8x128xf32>
      %158 = vector.extract_strided_slice %145 {offsets = [0, 256], sizes = [8, 128], strides = [1, 1]} : vector<8x512xf32> to vector<8x128xf32>
      %159 = math.tanh %158 : vector<8x128xf32>
      %160 = vector.extract_strided_slice %145 {offsets = [0, 384], sizes = [8, 128], strides = [1, 1]} : vector<8x512xf32> to vector<8x128xf32>
      %161 = arith.negf %160 : vector<8x128xf32>
      %162 = math.exp %161 : vector<8x128xf32>
      %cst_34 = arith.constant 1.000000e+00 : f32
      %163 = vector.broadcast %cst_34 : f32 to vector<8x128xf32>
      %164 = arith.addf %163, %162 : vector<8x128xf32>
      %165 = arith.divf %163, %164 : vector<8x128xf32>
      %166 = arith.mulf %157, %138 : vector<8x128xf32>
      %167 = arith.mulf %151, %159 : vector<8x128xf32>
      %168 = arith.addf %166, %167 : vector<8x128xf32>
      %169 = math.tanh %168 : vector<8x128xf32>
      %170 = arith.mulf %165, %169 : vector<8x128xf32>
      %171 = arith.addi %0, %c3_i32 : i32
      %172 = vector.broadcast %171 : i32 to vector<8x1xi32>
      %173 = arith.cmpi slt, %172, %12 : vector<8x1xi32>
      %174 = vector.shape_cast %173 : vector<8x1xi1> to vector<8x1xi1>
      %175 = vector.broadcast %174 : vector<8x1xi1> to vector<8x128xi1>
      %176 = arith.select %175, %170, %135 : vector<8x128xi1>, vector<8x128xf32>
      %177 = vector.shape_cast %173 : vector<8x1xi1> to vector<8x1xi1>
      %178 = vector.broadcast %177 : vector<8x1xi1> to vector<8x128xi1>
      %179 = arith.select %178, %168, %138 : vector<8x128xi1>, vector<8x128xf32>
      %c4_i32 = arith.constant 4 : i32
      %180 = arith.index_cast %c4_i32 : i32 to index
      %c0_35 = arith.constant 0 : index
      %c0_36 = arith.constant 0 : index
      %181 = vector.load %arg4[%180, %c0_35, %c0_36] : memref<8x8x512xbf16, #tpu.memory_space<vmem>>, vector<1x8x512xbf16>
      %182 = vector.shape_cast %181 : vector<1x8x512xbf16> to vector<8x512xbf16>
      %183 = arith.extf %182 : vector<8x512xbf16> to vector<8x512xf32>
      %184 = arith.truncf %176 : vector<8x128xf32> to vector<8x128xbf16>
      %cst_37 = arith.constant dense<0.000000e+00> : vector<8x512xf32>
      %185 = tpu.matmul %184, %13, %cst_37 {dimension_numbers = #tpu.dot_dimension_numbers<[1], [0], [0], [1], [0, 0, 1, 1], [], []>} : vector<8x128xbf16>, vector<128x512xbf16>, vector<8x512xf32> -> vector<8x512xf32>
      %186 = arith.addf %183, %185 : vector<8x512xf32>
      %187 = vector.extract_strided_slice %186 {offsets = [0, 0], sizes = [8, 128], strides = [1, 1]} : vector<8x512xf32> to vector<8x128xf32>
      %188 = arith.negf %187 : vector<8x128xf32>
      %189 = math.exp %188 : vector<8x128xf32>
      %cst_38 = arith.constant 1.000000e+00 : f32
      %190 = vector.broadcast %cst_38 : f32 to vector<8x128xf32>
      %191 = arith.addf %190, %189 : vector<8x128xf32>
      %192 = arith.divf %190, %191 : vector<8x128xf32>
      %193 = vector.extract_strided_slice %186 {offsets = [0, 128], sizes = [8, 128], strides = [1, 1]} : vector<8x512xf32> to vector<8x128xf32>
      %194 = arith.negf %193 : vector<8x128xf32>
      %195 = math.exp %194 : vector<8x128xf32>
      %cst_39 = arith.constant 1.000000e+00 : f32
      %196 = vector.broadcast %cst_39 : f32 to vector<8x128xf32>
      %197 = arith.addf %196, %195 : vector<8x128xf32>
      %198 = arith.divf %196, %197 : vector<8x128xf32>
      %199 = vector.extract_strided_slice %186 {offsets = [0, 256], sizes = [8, 128], strides = [1, 1]} : vector<8x512xf32> to vector<8x128xf32>
      %200 = math.tanh %199 : vector<8x128xf32>
      %201 = vector.extract_strided_slice %186 {offsets = [0, 384], sizes = [8, 128], strides = [1, 1]} : vector<8x512xf32> to vector<8x128xf32>
      %202 = arith.negf %201 : vector<8x128xf32>
      %203 = math.exp %202 : vector<8x128xf32>
      %cst_40 = arith.constant 1.000000e+00 : f32
      %204 = vector.broadcast %cst_40 : f32 to vector<8x128xf32>
      %205 = arith.addf %204, %203 : vector<8x128xf32>
      %206 = arith.divf %204, %205 : vector<8x128xf32>
      %207 = arith.mulf %198, %179 : vector<8x128xf32>
      %208 = arith.mulf %192, %200 : vector<8x128xf32>
      %209 = arith.addf %207, %208 : vector<8x128xf32>
      %210 = math.tanh %209 : vector<8x128xf32>
      %211 = arith.mulf %206, %210 : vector<8x128xf32>
      %212 = arith.addi %0, %c4_i32 : i32
      %213 = vector.broadcast %212 : i32 to vector<8x1xi32>
      %214 = arith.cmpi slt, %213, %12 : vector<8x1xi32>
      %215 = vector.shape_cast %214 : vector<8x1xi1> to vector<8x1xi1>
      %216 = vector.broadcast %215 : vector<8x1xi1> to vector<8x128xi1>
      %217 = arith.select %216, %211, %176 : vector<8x128xi1>, vector<8x128xf32>
      %218 = vector.shape_cast %214 : vector<8x1xi1> to vector<8x1xi1>
      %219 = vector.broadcast %218 : vector<8x1xi1> to vector<8x128xi1>
      %220 = arith.select %219, %209, %179 : vector<8x128xi1>, vector<8x128xf32>
      %c5_i32 = arith.constant 5 : i32
      %221 = arith.index_cast %c5_i32 : i32 to index
      %c0_41 = arith.constant 0 : index
      %c0_42 = arith.constant 0 : index
      %222 = vector.load %arg4[%221, %c0_41, %c0_42] : memref<8x8x512xbf16, #tpu.memory_space<vmem>>, vector<1x8x512xbf16>
      %223 = vector.shape_cast %222 : vector<1x8x512xbf16> to vector<8x512xbf16>
      %224 = arith.extf %223 : vector<8x512xbf16> to vector<8x512xf32>
      %225 = arith.truncf %217 : vector<8x128xf32> to vector<8x128xbf16>
      %cst_43 = arith.constant dense<0.000000e+00> : vector<8x512xf32>
      %226 = tpu.matmul %225, %13, %cst_43 {dimension_numbers = #tpu.dot_dimension_numbers<[1], [0], [0], [1], [0, 0, 1, 1], [], []>} : vector<8x128xbf16>, vector<128x512xbf16>, vector<8x512xf32> -> vector<8x512xf32>
      %227 = arith.addf %224, %226 : vector<8x512xf32>
      %228 = vector.extract_strided_slice %227 {offsets = [0, 0], sizes = [8, 128], strides = [1, 1]} : vector<8x512xf32> to vector<8x128xf32>
      %229 = arith.negf %228 : vector<8x128xf32>
      %230 = math.exp %229 : vector<8x128xf32>
      %cst_44 = arith.constant 1.000000e+00 : f32
      %231 = vector.broadcast %cst_44 : f32 to vector<8x128xf32>
      %232 = arith.addf %231, %230 : vector<8x128xf32>
      %233 = arith.divf %231, %232 : vector<8x128xf32>
      %234 = vector.extract_strided_slice %227 {offsets = [0, 128], sizes = [8, 128], strides = [1, 1]} : vector<8x512xf32> to vector<8x128xf32>
      %235 = arith.negf %234 : vector<8x128xf32>
      %236 = math.exp %235 : vector<8x128xf32>
      %cst_45 = arith.constant 1.000000e+00 : f32
      %237 = vector.broadcast %cst_45 : f32 to vector<8x128xf32>
      %238 = arith.addf %237, %236 : vector<8x128xf32>
      %239 = arith.divf %237, %238 : vector<8x128xf32>
      %240 = vector.extract_strided_slice %227 {offsets = [0, 256], sizes = [8, 128], strides = [1, 1]} : vector<8x512xf32> to vector<8x128xf32>
      %241 = math.tanh %240 : vector<8x128xf32>
      %242 = vector.extract_strided_slice %227 {offsets = [0, 384], sizes = [8, 128], strides = [1, 1]} : vector<8x512xf32> to vector<8x128xf32>
      %243 = arith.negf %242 : vector<8x128xf32>
      %244 = math.exp %243 : vector<8x128xf32>
      %cst_46 = arith.constant 1.000000e+00 : f32
      %245 = vector.broadcast %cst_46 : f32 to vector<8x128xf32>
      %246 = arith.addf %245, %244 : vector<8x128xf32>
      %247 = arith.divf %245, %246 : vector<8x128xf32>
      %248 = arith.mulf %239, %220 : vector<8x128xf32>
      %249 = arith.mulf %233, %241 : vector<8x128xf32>
      %250 = arith.addf %248, %249 : vector<8x128xf32>
      %251 = math.tanh %250 : vector<8x128xf32>
      %252 = arith.mulf %247, %251 : vector<8x128xf32>
      %253 = arith.addi %0, %c5_i32 : i32
      %254 = vector.broadcast %253 : i32 to vector<8x1xi32>
      %255 = arith.cmpi slt, %254, %12 : vector<8x1xi32>
      %256 = vector.shape_cast %255 : vector<8x1xi1> to vector<8x1xi1>
      %257 = vector.broadcast %256 : vector<8x1xi1> to vector<8x128xi1>
      %258 = arith.select %257, %252, %217 : vector<8x128xi1>, vector<8x128xf32>
      %259 = vector.shape_cast %255 : vector<8x1xi1> to vector<8x1xi1>
      %260 = vector.broadcast %259 : vector<8x1xi1> to vector<8x128xi1>
      %261 = arith.select %260, %250, %220 : vector<8x128xi1>, vector<8x128xf32>
      %c6_i32 = arith.constant 6 : i32
      %262 = arith.index_cast %c6_i32 : i32 to index
      %c0_47 = arith.constant 0 : index
      %c0_48 = arith.constant 0 : index
      %263 = vector.load %arg4[%262, %c0_47, %c0_48] : memref<8x8x512xbf16, #tpu.memory_space<vmem>>, vector<1x8x512xbf16>
      %264 = vector.shape_cast %263 : vector<1x8x512xbf16> to vector<8x512xbf16>
      %265 = arith.extf %264 : vector<8x512xbf16> to vector<8x512xf32>
      %266 = arith.truncf %258 : vector<8x128xf32> to vector<8x128xbf16>
      %cst_49 = arith.constant dense<0.000000e+00> : vector<8x512xf32>
      %267 = tpu.matmul %266, %13, %cst_49 {dimension_numbers = #tpu.dot_dimension_numbers<[1], [0], [0], [1], [0, 0, 1, 1], [], []>} : vector<8x128xbf16>, vector<128x512xbf16>, vector<8x512xf32> -> vector<8x512xf32>
      %268 = arith.addf %265, %267 : vector<8x512xf32>
      %269 = vector.extract_strided_slice %268 {offsets = [0, 0], sizes = [8, 128], strides = [1, 1]} : vector<8x512xf32> to vector<8x128xf32>
      %270 = arith.negf %269 : vector<8x128xf32>
      %271 = math.exp %270 : vector<8x128xf32>
      %cst_50 = arith.constant 1.000000e+00 : f32
      %272 = vector.broadcast %cst_50 : f32 to vector<8x128xf32>
      %273 = arith.addf %272, %271 : vector<8x128xf32>
      %274 = arith.divf %272, %273 : vector<8x128xf32>
      %275 = vector.extract_strided_slice %268 {offsets = [0, 128], sizes = [8, 128], strides = [1, 1]} : vector<8x512xf32> to vector<8x128xf32>
      %276 = arith.negf %275 : vector<8x128xf32>
      %277 = math.exp %276 : vector<8x128xf32>
      %cst_51 = arith.constant 1.000000e+00 : f32
      %278 = vector.broadcast %cst_51 : f32 to vector<8x128xf32>
      %279 = arith.addf %278, %277 : vector<8x128xf32>
      %280 = arith.divf %278, %279 : vector<8x128xf32>
      %281 = vector.extract_strided_slice %268 {offsets = [0, 256], sizes = [8, 128], strides = [1, 1]} : vector<8x512xf32> to vector<8x128xf32>
      %282 = math.tanh %281 : vector<8x128xf32>
      %283 = vector.extract_strided_slice %268 {offsets = [0, 384], sizes = [8, 128], strides = [1, 1]} : vector<8x512xf32> to vector<8x128xf32>
      %284 = arith.negf %283 : vector<8x128xf32>
      %285 = math.exp %284 : vector<8x128xf32>
      %cst_52 = arith.constant 1.000000e+00 : f32
      %286 = vector.broadcast %cst_52 : f32 to vector<8x128xf32>
      %287 = arith.addf %286, %285 : vector<8x128xf32>
      %288 = arith.divf %286, %287 : vector<8x128xf32>
      %289 = arith.mulf %280, %261 : vector<8x128xf32>
      %290 = arith.mulf %274, %282 : vector<8x128xf32>
      %291 = arith.addf %289, %290 : vector<8x128xf32>
      %292 = math.tanh %291 : vector<8x128xf32>
      %293 = arith.mulf %288, %292 : vector<8x128xf32>
      %294 = arith.addi %0, %c6_i32 : i32
      %295 = vector.broadcast %294 : i32 to vector<8x1xi32>
      %296 = arith.cmpi slt, %295, %12 : vector<8x1xi32>
      %297 = vector.shape_cast %296 : vector<8x1xi1> to vector<8x1xi1>
      %298 = vector.broadcast %297 : vector<8x1xi1> to vector<8x128xi1>
      %299 = arith.select %298, %293, %258 : vector<8x128xi1>, vector<8x128xf32>
      %300 = vector.shape_cast %296 : vector<8x1xi1> to vector<8x1xi1>
      %301 = vector.broadcast %300 : vector<8x1xi1> to vector<8x128xi1>
      %302 = arith.select %301, %291, %261 : vector<8x128xi1>, vector<8x128xf32>
      %c7_i32 = arith.constant 7 : i32
      %303 = arith.index_cast %c7_i32 : i32 to index
      %c0_53 = arith.constant 0 : index
      %c0_54 = arith.constant 0 : index
      %304 = vector.load %arg4[%303, %c0_53, %c0_54] : memref<8x8x512xbf16, #tpu.memory_space<vmem>>, vector<1x8x512xbf16>
      %305 = vector.shape_cast %304 : vector<1x8x512xbf16> to vector<8x512xbf16>
      %306 = arith.extf %305 : vector<8x512xbf16> to vector<8x512xf32>
      %307 = arith.truncf %299 : vector<8x128xf32> to vector<8x128xbf16>
      %cst_55 = arith.constant dense<0.000000e+00> : vector<8x512xf32>
      %308 = tpu.matmul %307, %13, %cst_55 {dimension_numbers = #tpu.dot_dimension_numbers<[1], [0], [0], [1], [0, 0, 1, 1], [], []>} : vector<8x128xbf16>, vector<128x512xbf16>, vector<8x512xf32> -> vector<8x512xf32>
      %309 = arith.addf %306, %308 : vector<8x512xf32>
      %310 = vector.extract_strided_slice %309 {offsets = [0, 0], sizes = [8, 128], strides = [1, 1]} : vector<8x512xf32> to vector<8x128xf32>
      %311 = arith.negf %310 : vector<8x128xf32>
      %312 = math.exp %311 : vector<8x128xf32>
      %cst_56 = arith.constant 1.000000e+00 : f32
      %313 = vector.broadcast %cst_56 : f32 to vector<8x128xf32>
      %314 = arith.addf %313, %312 : vector<8x128xf32>
      %315 = arith.divf %313, %314 : vector<8x128xf32>
      %316 = vector.extract_strided_slice %309 {offsets = [0, 128], sizes = [8, 128], strides = [1, 1]} : vector<8x512xf32> to vector<8x128xf32>
      %317 = arith.negf %316 : vector<8x128xf32>
      %318 = math.exp %317 : vector<8x128xf32>
      %cst_57 = arith.constant 1.000000e+00 : f32
      %319 = vector.broadcast %cst_57 : f32 to vector<8x128xf32>
      %320 = arith.addf %319, %318 : vector<8x128xf32>
      %321 = arith.divf %319, %320 : vector<8x128xf32>
      %322 = vector.extract_strided_slice %309 {offsets = [0, 256], sizes = [8, 128], strides = [1, 1]} : vector<8x512xf32> to vector<8x128xf32>
      %323 = math.tanh %322 : vector<8x128xf32>
      %324 = vector.extract_strided_slice %309 {offsets = [0, 384], sizes = [8, 128], strides = [1, 1]} : vector<8x512xf32> to vector<8x128xf32>
      %325 = arith.negf %324 : vector<8x128xf32>
      %326 = math.exp %325 : vector<8x128xf32>
      %cst_58 = arith.constant 1.000000e+00 : f32
      %327 = vector.broadcast %cst_58 : f32 to vector<8x128xf32>
      %328 = arith.addf %327, %326 : vector<8x128xf32>
      %329 = arith.divf %327, %328 : vector<8x128xf32>
      %330 = arith.mulf %321, %302 : vector<8x128xf32>
      %331 = arith.mulf %315, %323 : vector<8x128xf32>
      %332 = arith.addf %330, %331 : vector<8x128xf32>
      %333 = math.tanh %332 : vector<8x128xf32>
      %334 = arith.mulf %329, %333 : vector<8x128xf32>
      %335 = arith.addi %0, %c7_i32 : i32
      %336 = vector.broadcast %335 : i32 to vector<8x1xi32>
      %337 = arith.cmpi slt, %336, %12 : vector<8x1xi32>
      %338 = vector.shape_cast %337 : vector<8x1xi1> to vector<8x1xi1>
      %339 = vector.broadcast %338 : vector<8x1xi1> to vector<8x128xi1>
      %340 = arith.select %339, %334, %299 : vector<8x128xi1>, vector<8x128xf32>
      %341 = vector.shape_cast %337 : vector<8x1xi1> to vector<8x1xi1>
      %342 = vector.broadcast %341 : vector<8x1xi1> to vector<8x128xi1>
      %343 = arith.select %342, %332, %302 : vector<8x128xi1>, vector<8x128xf32>
      %c8_i32_59 = arith.constant 8 : i32
      %c0_60 = arith.constant 0 : index
      %c0_61 = arith.constant 0 : index
      %344 = vector.load %arg9[%c0_60, %c0_61] : memref<8x128xf32, #tpu.memory_space<vmem>>, vector<8x128xf32>
      tpu.vector_store %arg9[%c0_60, %c0_61], %340 {strides = array<i32>} : memref<8x128xf32, #tpu.memory_space<vmem>>, vector<8x128xf32>,
      %c0_62 = arith.constant 0 : index
      %c0_63 = arith.constant 0 : index
      %345 = vector.load %arg10[%c0_62, %c0_63] : memref<8x128xf32, #tpu.memory_space<vmem>>, vector<8x128xf32>
      tpu.vector_store %arg10[%c0_62, %c0_63], %343 {strides = array<i32>} : memref<8x128xf32, #tpu.memory_space<vmem>>, vector<8x128xf32>,
    } else {
    }
    %c0_i32_2 = arith.constant 0 : i32
    %9 = arith.cmpi eq, %arg1, %c0_i32_2 : i32
    %10 = arith.extui %9 : i1 to i32
    %c0_i32_3 = arith.constant 0 : i32
    %11 = arith.cmpi ne, %10, %c0_i32_3 : i32
    scf.if %11 {
      %c0 = arith.constant 0 : index
      %c0_4 = arith.constant 0 : index
      %12 = vector.load %arg9[%c0, %c0_4] : memref<8x128xf32, #tpu.memory_space<vmem>>, vector<8x128xf32>
      %13 = arith.truncf %12 : vector<8x128xf32> to vector<8x128xbf16>
      %c0_5 = arith.constant 0 : index
      %c0_6 = arith.constant 0 : index
      %14 = vector.load %arg6[%c0_5, %c0_6] : memref<128x128xbf16, #tpu.memory_space<vmem>>, vector<128x128xbf16>
      %cst = arith.constant dense<0.000000e+00> : vector<8x128xf32>
      %15 = tpu.matmul %13, %14, %cst {dimension_numbers = #tpu.dot_dimension_numbers<[1], [0], [0], [1], [0, 0, 1, 1], [], []>} : vector<8x128xbf16>, vector<128x128xbf16>, vector<8x128xf32> -> vector<8x128xf32>
      %c0_7 = arith.constant 0 : index
      %c0_8 = arith.constant 0 : index
      %16 = vector.load %arg7[%c0_7, %c0_8] : memref<1x128xf32, #tpu.memory_space<vmem>>, vector<1x128xf32>
      %17 = vector.broadcast %16 : vector<1x128xf32> to vector<8x128xf32>
      %18 = arith.addf %15, %17 : vector<8x128xf32>
      %c0_9 = arith.constant 0 : index
      %c0_10 = arith.constant 0 : index
      %19 = vector.load %arg8[%c0_9, %c0_10] : memref<8x128xf32, #tpu.memory_space<vmem>>, vector<8x128xf32>
      tpu.vector_store %arg8[%c0_9, %c0_10], %18 {strides = array<i32>} : memref<8x128xf32, #tpu.memory_space<vmem>>, vector<8x128xf32>,
    } else {
    }
    return
  }
  func.func @transform_0(%arg0: i32, %arg1: i32, %arg2: memref<1xi32, #tpu.memory_space<smem>>) -> (i32, i32) {
    %c0_i32 = arith.constant 0 : i32
    %c0_i32_0 = arith.constant 0 : i32
    return %arg0, %c0_i32 : i32, i32
  }
  func.func @transform_1(%arg0: i32, %arg1: i32, %arg2: memref<1xi32, #tpu.memory_space<smem>>) -> (i32, i32, i32) {
    %c0_i32 = arith.constant 0 : i32
    %c0_i32_0 = arith.constant 0 : i32
    return %arg1, %arg0, %c0_i32 : i32, i32, i32
  }
  func.func @transform_2(%arg0: i32, %arg1: i32, %arg2: memref<1xi32, #tpu.memory_space<smem>>) -> (i32, i32) {
    %c0_i32 = arith.constant 0 : i32
    %c0_i32_0 = arith.constant 0 : i32
    %c0_i32_1 = arith.constant 0 : i32
    return %c0_i32, %c0_i32_0 : i32, i32
  }
  func.func @transform_3(%arg0: i32, %arg1: i32, %arg2: memref<1xi32, #tpu.memory_space<smem>>) -> (i32, i32) {
    %c0_i32 = arith.constant 0 : i32
    %c0_i32_0 = arith.constant 0 : i32
    %c0_i32_1 = arith.constant 0 : i32
    return %c0_i32, %c0_i32_0 : i32, i32
  }
  func.func @transform_4(%arg0: i32, %arg1: i32, %arg2: memref<1xi32, #tpu.memory_space<smem>>) -> (i32, i32) {
    %c0_i32 = arith.constant 0 : i32
    %c0_i32_0 = arith.constant 0 : i32
    %c0_i32_1 = arith.constant 0 : i32
    return %c0_i32, %c0_i32_0 : i32, i32
  }
  func.func @transform_5(%arg0: i32, %arg1: i32, %arg2: memref<1xi32, #tpu.memory_space<smem>>) -> (i32, i32) {
    %c0_i32 = arith.constant 0 : i32
    %c0_i32_0 = arith.constant 0 : i32
    return %arg0, %c0_i32 : i32, i32
  }
}

</mosaic_0001>

<bundles_post_ra>
// kernel: tpu_custom_call.1
= control target key start
LH: loop header
LB: loop body
LE: loop exit
PB: predicated region body
PF: predicated region fallthrough
CT: control target
= control target key end

     0   :  { %12 = vsyncpa [#allocation7], 0  ;;  %s2360_s0 = inlined_call_operand.<no memory space> [shape: s32[1], index: 0, kind: input, shape index: {}]   ;;  %s2361_s1 = inlined_call_operand.vmem [shape: s32[8,1], index: 1, kind: input, shape index: {}]   ;;  %s2362_s2 = inlined_call_operand.hbm [shape: bf16[8,8,512], index: 2, kind: input, shape index: {}]   ;;  %s2363_s3 = inlined_call_operand.hbm [shape: bf16[128,512], index: 3, kind: input, shape index: {}]   ;;  %s2364_s4 = inlined_call_operand.hbm [shape: bf16[128,128], index: 4, kind: input, shape index: {}]   ;;  %s2365_s5 = inlined_call_operand.vmem [shape: f32[1,128], index: 5, kind: input, shape index: {}]   ;;  %s2366_s6 = inlined_call_operand.hbm [shape: f32[8,128], index: 6, kind: output, shape index: {}]  }
   0x1   :  { %13 = vsyncpa [#allocation10], 0 }
   0x2   :  { %14 = vsyncpa [#allocation8], 0  ;;  %s1848_s21 = smov [#allocation9]   ;;  %s1849_s23 = smov [#allocation6]  }
   0x3   :  { %s34_s22 = sshll.u32 %s1848_s21, 4  ;;  %s22_s24 = sshll.u32 %s1849_s23, 4  ;;  %s35_s22 = int_to_ptr.vmem [resolvable:$true] %s34_s22  ;;  %s23_s24 = int_to_ptr.vmem [resolvable:$true] %s22_s24 }
   0x4   :  { %s1770_s25 = scalar_lea.vmem %s35_s22, 4096  ;;  %p1775_p1 = scmp.lt.s32.totalorder %s35_s22, %s35_s22 }
   0x5   :  { %p1771_p0 = scmp.ne.s32.totalorder %s35_s22, %s1770_s25  ;;  %p1776_p2 = scmp.lt.s32.totalorder %s1770_s25, %s1770_s25 }
   0x7   :  { %p1777_p3 = por %p1776_p2, %p1775_p1 }
   0x9   :  { %p1778_p4 = pnand %p1777_p3, %p1771_p0 }
   0xb   :  { %1781 = shalt.err (!%p1778_p4)
}
   0xc   :  { %s1850_s26 = smov 256   ;;  %s1851_s27 = smov 16  }
   0xd   :  { %40 = dma.hbm_to_vmem [thread:$0]  %s2363_s3, 4096, %s35_s22, [#allocation10], %s1850_s26, %s1850_s26, %s1851_s27  }
   0xe   :  { %s1790_s30 = scalar_lea.vmem %s23_s24, 2048  ;;  %p1795_p6 = scmp.lt.s32.totalorder %s23_s24, %s23_s24 }
   0xf   :  { %p1791_p5 = scmp.ne.s32.totalorder %s23_s24, %s1790_s30  ;;  %p1796_p7 = scmp.lt.s32.totalorder %s1790_s30, %s1790_s30 }
  0x11   :  { %p1797_p8 = por %p1796_p7, %p1795_p6 }
  0x13   :  { %p1798_p9 = pnand %p1797_p8, %p1791_p5 }
  0x15   :  { %1801 = shalt.err (!%p1798_p9)
}
  0x16   :  { %28 = dma.hbm_to_vmem [thread:$0]  %s2362_s2, 2048, %s23_s24, [#allocation7], %s1850_s26, %s1850_s26, %s1851_s27  }
  0x17   :  { %s1852_s9 = smov [#allocation11]  }
  0x18   :  { %s46_s10 = sshll.u32 %s1852_s9, 4  ;;  %s47_s10 = int_to_ptr.vmem [resolvable:$true] %s46_s10 }
  0x19   :  { %s1810_s11 = scalar_lea.vmem %s47_s10, 1024  ;;  %p1815_p11 = scmp.lt.s32.totalorder %s47_s10, %s47_s10 }
  0x1a   :  { %p1811_p10 = scmp.ne.s32.totalorder %s47_s10, %s1810_s11  ;;  %p1816_p12 = scmp.lt.s32.totalorder %s1810_s11, %s1810_s11 }
  0x1c   :  { %p1817_p13 = por %p1816_p12, %p1815_p11 }
  0x1e   :  { %p1818_p0 = pnand %p1817_p13, %p1811_p10 }
  0x20   :  { %1821 = shalt.err (!%p1818_p0)
}
  0x21   :  { %s1853_s3 = smov 64   ;;  %s1854_s12 = smov 4  }
  0x22   :  { %52 = dma.hbm_to_vmem [thread:$0]  %s2364_s4, 1024, %s47_s10, [#allocation10], %s1853_s3, %s1853_s3, %s1854_s12  }
  0x23   :  { %1842 = dma.done.wait [#allocation7], 2048  }
  0x24   :  { %1843 = vsyncadd [#allocation7], 4294965248 }
  0x25   :  { %1844 = dma.done.wait [#allocation10], 5120  }
  0x26   :  { %1845 = vsyncadd [#allocation10], 4294962176  ;;  %v1855_v0 = vmov 0.0   ;;  %p1430_p1 = scmp.le.s32.totalorder %s2360_s0, 0 }
  0x27   :  { %70 = vst [vmem:[#allocation2] sm:$0xff] %v1855_v0  ;;  %71 = vst [vmem:[#allocation3] sm:$0xff] %v1855_v0 }
  0x28   :  { %76 = sbr.rel (%p1430_p1) target bundleno = 2094 (0x82e), region = 41 }
  0x2d   :  { %v1908_v1 = vld [vmem:[#allocation9 + $0xe4] ss:$16 sps:$4 sm:$0xff]   ;;  %v1910_v2 = vld [vmem:[#allocation9 + $0xe0] ss:$16 sps:$4 sm:$0xff]   ;;  %v1856_v3 = vmov 0   ;;  %v113_v51 = vld [vmem:[#allocation6 + $0x8] sm:$0xff] }
  0x2e   :  { %311 = vmatprep.mubr.bf16.mxu0 %v1856_v3  ;;  %352 = vmatprep.mubr.bf16.mxu1 %v1856_v3  ;;  %v1915_v4 = vld [vmem:[#allocation9 + $0xc4] ss:$16 sps:$4 sm:$0xff]   ;;  %v1919_v5 = vld [vmem:[#allocation9 + $0xc0] ss:$16 sps:$4 sm:$0xff]   ;;  %v1925_v7 = vld [vmem:[#allocation9 + $0xec] ss:$16 sps:$4 sm:$0xff]   ;;  %v117_v55 = vunpack.c.h.bf16 %v113_v51  ;;  %v116_v57 = vunpack.c.l.bf16 %v113_v51 }
  0x2f   :  { %279 = vmatprep.subr.bf16.mxu0 %v1908_v1  ;;  %1544 = vset.pattern.permute.xlu0 %v1856_v3  ;;  %v1923_v6 = vld [vmem:[#allocation9 + $0xa4] ss:$16 sps:$4 sm:$0xff]   ;;  %v1927_v8 = vld [vmem:[#allocation9 + $0xe8] ss:$16 sps:$4 sm:$0xff]   ;;  %v1930_v9 = vld [vmem:[#allocation9 + $0xa0] ss:$16 sps:$4 sm:$0xff]  }
  0x30   :  { %280 = vmatpush1.bf16.msra.mxu0 %v1910_v2  ;;  %1545 = vset.pattern.permute.xlu1 %v1856_v3  ;;  %v1934_v10 = vld [vmem:[#allocation9 + $0x84] ss:$16 sps:$4 sm:$0xff]   ;;  %v1937_v11 = vld [vmem:[#allocation9 + $0xcc] ss:$16 sps:$4 sm:$0xff]   ;;  %v1939_v12 = vld [vmem:[#allocation9 + $0xc8] ss:$16 sps:$4 sm:$0xff]  }
  0x31   :  { %281 = vmatprep.subr.bf16.mxu0 %v1915_v4  ;;  %320 = vmatprep.subr.bf16.mxu1 %v1925_v7  ;;  %v1943_v13 = vld [vmem:[#allocation9 + $0x80] ss:$16 sps:$4 sm:$0xff]   ;;  %v1945_v14 = vld [vmem:[#allocation9 + $0x64] ss:$16 sps:$4 sm:$0xff]   ;;  %v1947_v15 = vld [vmem:[#allocation9 + $0xac] ss:$16 sps:$4 sm:$0xff]  }
  0x32   :  { %321 = vmatpush1.bf16.msra.mxu1 %v1927_v8  ;;  %v1951_v16 = vld [vmem:[#allocation9 + $0xa8] ss:$16 sps:$4 sm:$0xff]   ;;  %v1954_v17 = vld [vmem:[#allocation9 + $0x8c] ss:$16 sps:$4 sm:$0xff]   ;;  %v1957_v18 = vld [vmem:[#allocation9 + $0x60] ss:$16 sps:$4 sm:$0xff]  }
  0x33   :  { %322 = vmatprep.subr.bf16.mxu1 %v1937_v11  ;;  %v1960_v19 = vld [vmem:[#allocation9 + $0x44] ss:$16 sps:$4 sm:$0xff]   ;;  %v1963_v20 = vld [vmem:[#allocation9 + $0x88] ss:$16 sps:$4 sm:$0xff]   ;;  %v1966_v21 = vld [vmem:[#allocation9 + $0x6c] ss:$16 sps:$4 sm:$0xff]  }
  0x34   :  { %282 = vmatpush1.bf16.msra.mxu0 %v1919_v5  ;;  %v1968_v22 = vld [vmem:[#allocation9 + $0x40] ss:$16 sps:$4 sm:$0xff]   ;;  %v1971_v23 = vld [vmem:[#allocation9 + $0x24] ss:$16 sps:$4 sm:$0xff]   ;;  %v1975_v24 = vld [vmem:[#allocation9 + $0x68] ss:$16 sps:$4 sm:$0xff]  }
  0x35   :  { %283 = vmatprep.subr.bf16.mxu0 %v1923_v6  ;;  %v1978_v25 = vld [vmem:[#allocation9 + $0x4c] ss:$16 sps:$4 sm:$0xff]   ;;  %v1983_v26 = vld [vmem:[%s2361_s1] sm:$0xff]  ;;  %v1995_v30 = vld [vmem:[#allocation9 + $0x48] ss:$16 sps:$4 sm:$0xff]  }
  0x36   :  { %323 = vmatpush1.bf16.msra.mxu1 %v1939_v12  ;;  %vm1466_vm0 = vcmp.gt.s32.totalorder %v1983_v26, 0  ;;  %v1987_v27 = vld [vmem:[#allocation9 + $0x20] ss:$16 sps:$4 sm:$0xff]   ;;  %vm1470_vm1 = vcmp.gt.s32.totalorder %v1983_v26, 1  ;;  %v1992_v29 = vld [vmem:[#allocation9 + $0x4] ss:$16 sps:$4 sm:$0xff]  }
  0x37   :  { %324 = vmatprep.subr.bf16.mxu1 %v1947_v15  ;;  %v391_v28 = vsel %vm1466_vm0, 1, %v1856_v3  ;;  %v1998_v31 = vld [vmem:[#allocation9 + $0x2c] ss:$16 sps:$4 sm:$0xff]   ;;  %v519_v32 = vsel %vm1470_vm1, 1, %v1856_v3  ;;  %v2002_v33 = vld [vmem:[#allocation9] ss:$16 sps:$4 sm:$0xff]  }
  0x38   :  { %284 = vmatpush1.bf16.msra.mxu0 %v1930_v9  ;;  %393 = vperm.xlu0 %1544, %v391_v28   ;;  %v2004_v34 = vld [vmem:[#allocation2] sm:$0xff]  ;;  %vm1482_vm2 = vcmp.gt.s32.totalorder %v1983_v26, 4  ;;  %v2009_v35 = vld [vmem:[#allocation9 + $0x28] ss:$16 sps:$4 sm:$0xff]   ;;  %v2012_v36 = vld [vmem:[#allocation9 + $0xc] ss:$16 sps:$4 sm:$0xff]  }
  0x39   :  { %285 = vmatprep.subr.bf16.mxu0 %v1934_v10  ;;  %v118_v37 = vpack.c.bf16 %v2004_v34, %v2004_v34  ;;  %v903_v38 = vsel %vm1482_vm2, 1, %v1856_v3  ;;  %vm1490_vm3 = vcmp.gt.s32.totalorder %v1983_v26, 6  ;;  %v2020_v39 = vld [vmem:[#allocation9 + $0x8] ss:$16 sps:$4 sm:$0xff]   ;;  %v112_v41 = vld [vmem:[#allocation6] sm:$0xff]  ;;  %vm1474_vm5 = vcmp.gt.s32.totalorder %v1983_v26, 2 }
  0x3a   :  { %325 = vmatpush1.bf16.msra.mxu1 %v1951_v16  ;;  %v1159_v40 = vsel %vm1490_vm3, 1, %v1856_v3  ;;  %v114_v42 = vunpack.c.l.bf16 %v112_v41  ;;  %v115_v43 = vunpack.c.h.bf16 %v112_v41  ;;  %v111_v41 = vld [vmem:[#allocation3] sm:$0xff]  ;;  %vm1478_vm6 = vcmp.gt.s32.totalorder %v1983_v26, 3 }
  0x3b   :  { %326 = vmatprep.subr.bf16.mxu1 %v1954_v17  ;;  %vm1486_vm7 = vcmp.gt.s32.totalorder %v1983_v26, 5  ;;  %vm1494_vm8 = vcmp.gt.s32.totalorder %v1983_v26, 7 }
  0x3c   :  { %286 = vmatpush1.bf16.msra.mxu0 %v1943_v13  ;;  %521 = vperm.xlu0 %1544, %v519_v32  }
  0x3d   :  { %287 = vmatprep.subr.bf16.mxu0 %v1945_v14 }
  0x3e   :  { %327 = vmatpush1.bf16.msra.mxu1 %v1963_v20 }
  0x3f   :  { %328 = vmatprep.subr.bf16.mxu1 %v1966_v21 }
  0x40   :  { %288 = vmatpush1.bf16.msra.mxu0 %v1957_v18  ;;  %905 = vperm.xlu0 %1544, %v903_v38  }
  0x41   :  { %289 = vmatprep.subr.bf16.mxu0 %v1960_v19 }
  0x42   :  { %329 = vmatpush1.bf16.msra.mxu1 %v1975_v24 }
  0x43   :  { %330 = vmatprep.subr.bf16.mxu1 %v1978_v25 }
  0x44   :  { %290 = vmatpush1.bf16.msra.mxu0 %v1968_v22  ;;  %1161 = vperm.xlu0 %1544, %v1159_v40  }
  0x45   :  { %291 = vmatprep.subr.bf16.mxu0 %v1971_v23 }
  0x46   :  { %331 = vmatpush1.bf16.msra.mxu1 %v1995_v30 }
  0x47   :  { %332 = vmatprep.subr.bf16.mxu1 %v1998_v31 }
  0x48   :  { %292 = vmatpush1.bf16.msra.mxu0 %v1987_v27 }
  0x49   :  { %293 = vmatprep.subr.bf16.mxu0 %v1992_v29 }
  0x4a   :  { %333 = vmatpush1.bf16.msra.mxu1 %v2009_v35 }
  0x4b   :  { %334 = vmatprep.subr.bf16.mxu1 %v2012_v36 }
  0x4c   :  { %294 = vmatpush1.bf16.msra.mxu0 %v2002_v33 }
  0x4d   :  { %406 = vmatprep.subr.bf16.mxu0 %v1908_v1 }
  0x4e   :  { %335 = vmatpush1.bf16.msra.mxu1 %v2020_v39 }
  0x4f   :  { %312 = vmatmul.mubr.bf16.vlgmr.msra.gmra.mxu0 %v118_v37  ;;  %447 = vmatprep.subr.bf16.mxu1 %v1925_v7 }
  0x50   :  { %407 = vmatpush1.bf16.msra.mxu0 %v1910_v2  ;;  %438 = vmatprep.mubr.bf16.mxu0 %v1856_v3 }
  0x51   :  { %408 = vmatprep.subr.bf16.mxu0 %v1915_v4  ;;  %353 = vmatmul.mubr.bf16.vlgmr.msra.gmra.mxu1 %v118_v37 }
  0x52   :  { %448 = vmatpush1.bf16.msra.mxu1 %v1927_v8  ;;  %479 = vmatprep.mubr.bf16.mxu1 %v1856_v3 }
  0x53   :  { %449 = vmatprep.subr.bf16.mxu1 %v1937_v11 }
  0x54   :  { %409 = vmatpush1.bf16.msra.mxu0 %v1919_v5 }
  0x55   :  { %410 = vmatprep.subr.bf16.mxu0 %v1923_v6 }
  0x56   :  { %450 = vmatpush1.bf16.msra.mxu1 %v1939_v12 }
  0x57   :  { %451 = vmatprep.subr.bf16.mxu1 %v1947_v15 }
  0x58   :  { %411 = vmatpush1.bf16.msra.mxu0 %v1930_v9 }
  0x59   :  { %412 = vmatprep.subr.bf16.mxu0 %v1934_v10 }
  0x5a   :  { %452 = vmatpush1.bf16.msra.mxu1 %v1951_v16 }
  0x5b   :  { %453 = vmatprep.subr.bf16.mxu1 %v1954_v17 }
  0x5c   :  { %413 = vmatpush1.bf16.msra.mxu0 %v1943_v13 }
  0x5d   :  { %414 = vmatprep.subr.bf16.mxu0 %v1945_v14 }
  0x5e   :  { %454 = vmatpush1.bf16.msra.mxu1 %v1963_v20 }
  0x5f   :  { %455 = vmatprep.subr.bf16.mxu1 %v1966_v21 }
  0x60   :  { %415 = vmatpush1.bf16.msra.mxu0 %v1957_v18 }
  0x61   :  { %416 = vmatprep.subr.bf16.mxu0 %v1960_v19 }
  0x62   :  { %456 = vmatpush1.bf16.msra.mxu1 %v1975_v24 }
  0x63   :  { %457 = vmatprep.subr.bf16.mxu1 %v1978_v25 }
  0x64   :  { %417 = vmatpush1.bf16.msra.mxu0 %v1968_v22 }
  0x65   :  { %418 = vmatprep.subr.bf16.mxu0 %v1971_v23 }
  0x66   :  { %458 = vmatpush1.bf16.msra.mxu1 %v1995_v30 }
  0x67   :  { %459 = vmatprep.subr.bf16.mxu1 %v1998_v31 }
  0x68   :  { %419 = vmatpush1.bf16.msra.mxu0 %v1987_v27 }
  0x69   :  { %420 = vmatprep.subr.bf16.mxu0 %v1992_v29 }
  0x6a   :  { %460 = vmatpush1.bf16.msra.mxu1 %v2009_v35 }
  0x6b   :  { %461 = vmatprep.subr.bf16.mxu1 %v2012_v36 }
  0x6c   :  { %421 = vmatpush1.bf16.msra.mxu0 %v2002_v33 }
  0x6d   :  { %534 = vmatprep.subr.bf16.mxu0 %v1908_v1 }
  0x6e   :  { %462 = vmatpush1.bf16.msra.mxu1 %v2020_v39 }
  0x6f   :  { %575 = vmatprep.subr.bf16.mxu1 %v1925_v7 }
 0x10f   :  { %v313_v44 = vpop.f32.mrf.mxu0 }
 0x110   :  { %v361_v45 = vadd.f32 %v313_v44, %v114_v42  ;;  %v394_v42 = vpop.permute.xlu0 %393 }
 0x111   :  { %v315_v46 = vpop.f32.mrf.mxu0  ;;  %v354_v52 = vpop.f32.mrf.mxu1  ;;  %vm395_vm4 = vcmp.eq.s32.totalorder %v394_v42, 1 }
 0x112   :  { %v1463_v47 = vmul.f32 -1.442695, %v361_v45  ;;  %v362_v48 = vadd.f32 %v315_v46, %v115_v43  ;;  %v363_v60 = vadd.f32 %v354_v52, %v116_v57  ;;  %v399_v57 = vld [vmem:[#allocation6 + $0x10] sm:$0xff] }
 0x113   :  { %v317_v49 = vpop.f32.mrf.mxu0  ;;  %v356_v54 = vpop.f32.mrf.mxu1 }
 0x114   :  { %1594 = vpow2.f32 %v1463_v47  ;;  %v1464_v50 = vmul.f32 -1.442695, %v362_v48  ;;  %v364_v59 = vadd.f32 %v356_v54, %v117_v55  ;;  %v775_v54 = vsel %vm1478_vm6, 1, %v1856_v3 }
 0x115   :  { %v318_v53 = vpop.f32.mrf.mxu0  ;;  %v358_v56 = vpop.f32.mrf.mxu1  ;;  %v1031_v55 = vsel %vm1486_vm7, 1, %v1856_v3 }
 0x116   :  { %1596 = vpow2.f32 %v1464_v50  ;;  %v1465_v61 = vmul.f32 -1.442695, %v364_v59  ;;  %v1287_v56 = vsel %vm1494_vm8, 1, %v1856_v3  ;;  %v402_v59 = vunpack.c.h.bf16 %v399_v57 }
 0x117   :  { %v359_v58 = vpop.f32.mrf.mxu1  ;;  %1598 = vtanh.f32 %v363_v60 }
 0x118   :  { %1600 = vpow2.f32 %v1465_v61  ;;  %v401_v58 = vunpack.c.l.bf16 %v399_v57 }
 0x121   :  { %v1595_v62 = vpop.eup %1594 }
 0x122   :  { %v368_v63 = vadd.f32 1.0, %v1595_v62 }
 0x123   :  { %v1597_v28 = vpop.eup %1596 }
 0x124   :  { %1602 = vrcp.f32 %v368_v63  ;;  %v374_v32 = vadd.f32 1.0, %v1597_v28  ;;  %v1599_v37 = vpop.eup %1598 }
 0x125   :  { %v1601_v38 = vpop.eup %1600 }
 0x126   :  { %1604 = vrcp.f32 %v374_v32  ;;  %v381_v44 = vadd.f32 1.0, %v1601_v38 }
 0x128   :  { %1606 = vrcp.f32 %v381_v44 }
 0x131   :  { %v1603_v40 = vpop.eup %1602 }
 0x132   :  { %v385_v46 = vmul.f32 %v1603_v40, %v1599_v37 }
 0x133   :  { %v1605_v43 = vpop.eup %1604 }
 0x134   :  { %v384_v45 = vmul.f32 %v1605_v43, %v111_v41  ;;  %v400_v43 = vld [vmem:[#allocation6 + $0x18] sm:$0xff] }
 0x135   :  { %v1607_v49 = vpop.eup %1606  ;;  %v404_v44 = vunpack.c.h.bf16 %v400_v43 }
 0x136   :  { %v386_v47 = vadd.f32 %v385_v46, %v384_v45  ;;  %v403_v46 = vunpack.c.l.bf16 %v400_v43 }
 0x138   :  { %1608 = vtanh.f32 %v386_v47  ;;  %v2061_v48 = vsel %vm395_vm4, %v386_v47, %v111_v41 }
 0x145   :  { %v1609_v50 = vpop.eup %1608 }
 0x146   :  { %v388_v51 = vmul.f32 %v1609_v50, %v1607_v49 }
 0x148   :  { %v2064_v52 = vsel %vm395_vm4, %v388_v51, %v2004_v34  ;;  %v647_v34 = vsel %vm1474_vm5, 1, %v1856_v3 }
 0x149   :  { %v405_v53 = vpack.c.bf16 %v2064_v52, %v2064_v52  ;;  %649 = vperm.xlu1 %1545, %v647_v34  }
 0x14b   :  { %439 = vmatmul.mubr.bf16.vlgmr.msra.gmra.mxu0 %v405_v53  ;;  %480 = vmatmul.mubr.bf16.vlgmr.msra.gmra.mxu1 %v405_v53 }
 0x14c   :  { %535 = vmatpush1.bf16.msra.mxu0 %v1910_v2  ;;  %576 = vmatpush1.bf16.msra.mxu1 %v1927_v8 }
 0x14d   :  { %536 = vmatprep.subr.bf16.mxu0 %v1915_v4  ;;  %577 = vmatprep.subr.bf16.mxu1 %v1937_v11 }
 0x14e   :  { %566 = vmatprep.mubr.bf16.mxu0 %v1856_v3  ;;  %607 = vmatprep.mubr.bf16.mxu1 %v1856_v3 }
 0x14f   :  { %777 = vperm.xlu1 %1545, %v775_v54  }
 0x150   :  { %537 = vmatpush1.bf16.msra.mxu0 %v1919_v5  ;;  %578 = vmatpush1.bf16.msra.mxu1 %v1939_v12 }
 0x151   :  { %538 = vmatprep.subr.bf16.mxu0 %v1923_v6  ;;  %579 = vmatprep.subr.bf16.mxu1 %v1947_v15 }
 0x153   :  { %1033 = vperm.xlu1 %1545, %v1031_v55  }
 0x154   :  { %539 = vmatpush1.bf16.msra.mxu0 %v1930_v9  ;;  %580 = vmatpush1.bf16.msra.mxu1 %v1951_v16 }
 0x155   :  { %540 = vmatprep.subr.bf16.mxu0 %v1934_v10  ;;  %581 = vmatprep.subr.bf16.mxu1 %v1954_v17 }
 0x157   :  { %1289 = vperm.xlu1 %1545, %v1287_v56  }
 0x158   :  { %541 = vmatpush1.bf16.msra.mxu0 %v1943_v13  ;;  %582 = vmatpush1.bf16.msra.mxu1 %v1963_v20 }
 0x159   :  { %542 = vmatprep.subr.bf16.mxu0 %v1945_v14  ;;  %583 = vmatprep.subr.bf16.mxu1 %v1966_v21 }
 0x15c   :  { %543 = vmatpush1.bf16.msra.mxu0 %v1957_v18  ;;  %584 = vmatpush1.bf16.msra.mxu1 %v1975_v24 }
 0x15d   :  { %544 = vmatprep.subr.bf16.mxu0 %v1960_v19  ;;  %585 = vmatprep.subr.bf16.mxu1 %v1978_v25 }
 0x160   :  { %545 = vmatpush1.bf16.msra.mxu0 %v1968_v22  ;;  %586 = vmatpush1.bf16.msra.mxu1 %v1995_v30 }
 0x161   :  { %546 = vmatprep.subr.bf16.mxu0 %v1971_v23  ;;  %587 = vmatprep.subr.bf16.mxu1 %v1998_v31 }
 0x164   :  { %547 = vmatpush1.bf16.msra.mxu0 %v1987_v27  ;;  %588 = vmatpush1.bf16.msra.mxu1 %v2009_v35 }
 0x165   :  { %548 = vmatprep.subr.bf16.mxu0 %v1992_v29  ;;  %589 = vmatprep.subr.bf16.mxu1 %v2012_v36 }
 0x168   :  { %549 = vmatpush1.bf16.msra.mxu0 %v2002_v33  ;;  %590 = vmatpush1.bf16.msra.mxu1 %v2020_v39 }
 0x169   :  { %662 = vmatprep.subr.bf16.mxu0 %v1908_v1  ;;  %703 = vmatprep.subr.bf16.mxu1 %v1925_v7 }
 0x20b   :  { %v440_v60 = vpop.f32.mrf.mxu0  ;;  %v481_v61 = vpop.f32.mrf.mxu1 }
 0x20c   :  { %v488_v62 = vadd.f32 %v440_v60, %v401_v58  ;;  %v490_v50 = vadd.f32 %v481_v61, %v403_v46 }
 0x20d   :  { %v442_v63 = vpop.f32.mrf.mxu0  ;;  %v483_v28 = vpop.f32.mrf.mxu1 }
 0x20e   :  { %v1467_v32 = vmul.f32 -1.442695, %v488_v62  ;;  %v489_v37 = vadd.f32 %v442_v63, %v402_v59  ;;  %v491_v45 = vadd.f32 %v483_v28, %v404_v44  ;;  %v522_v62 = vpop.permute.xlu0 %521 }
 0x20f   :  { %v444_v38 = vpop.f32.mrf.mxu0  ;;  %v485_v40 = vpop.f32.mrf.mxu1  ;;  %vm523_vm9 = vcmp.eq.s32.totalorder %v522_v62, 1 }
 0x210   :  { %1610 = vpow2.f32 %v1467_v32  ;;  %v1468_v41 = vmul.f32 -1.442695, %v489_v37  ;;  %v1469_v47 = vmul.f32 -1.442695, %v491_v45 }
 0x211   :  { %v445_v42 = vpop.f32.mrf.mxu0  ;;  %v486_v26 = vpop.f32.mrf.mxu1 }
 0x212   :  { %1612 = vpow2.f32 %v1468_v41 }
 0x213   :  { %1614 = vpow2.f32 %v1469_v47 }
 0x21d   :  { %v1611_v49 = vpop.eup %1610 }
 0x21e   :  { %v495_v51 = vadd.f32 1.0, %v1611_v49 }
 0x21f   :  { %v1613_v53 = vpop.eup %1612 }
 0x220   :  { %1616 = vrcp.f32 %v495_v51  ;;  %v501_v34 = vadd.f32 1.0, %v1613_v53  ;;  %v1615_v54 = vpop.eup %1614 }
 0x221   :  { %1618 = vtanh.f32 %v490_v50  ;;  %v508_v58 = vadd.f32 1.0, %v1615_v54  ;;  %v528_v54 = vld [vmem:[#allocation6 + $0x28] sm:$0xff] }
 0x222   :  { %1620 = vrcp.f32 %v501_v34 }
 0x223   :  { %1622 = vrcp.f32 %v508_v58 }
 0x22d   :  { %v1617_v55 = vpop.eup %1616 }
 0x22e   :  { %v1619_v56 = vpop.eup %1618 }
 0x22f   :  { %v1621_v57 = vpop.eup %1620  ;;  %v512_v59 = vmul.f32 %v1619_v56, %v1617_v55  ;;  %v532_v55 = vunpack.c.h.bf16 %v528_v54 }
 0x230   :  { %v511_v60 = vmul.f32 %v1621_v57, %v2061_v48  ;;  %v1623_v28 = vpop.eup %1622  ;;  %v531_v57 = vunpack.c.l.bf16 %v528_v54 }
 0x232   :  { %v513_v63 = vadd.f32 %v512_v59, %v511_v60 }
 0x234   :  { %1624 = vtanh.f32 %v513_v63  ;;  %v2112_v61 = vsel %vm523_vm9, %v513_v63, %v2061_v48  ;;  %v527_v48 = vld [vmem:[#allocation6 + $0x20] sm:$0xff] }
 0x235   :  { %v530_v41 = vunpack.c.h.bf16 %v527_v48 }
 0x241   :  { %v1625_v32 = vpop.eup %1624 }
 0x242   :  { %v515_v37 = vmul.f32 %v1625_v32, %v1623_v28 }
 0x244   :  { %v2115_v38 = vsel %vm523_vm9, %v515_v37, %v2064_v52  ;;  %v529_v52 = vunpack.c.l.bf16 %v527_v48  ;;  %v650_v48 = vpop.permute.xlu1 %649 }
 0x245   :  { %v533_v40 = vpack.c.bf16 %v2115_v38, %v2115_v38  ;;  %vm651_vm10 = vcmp.eq.s32.totalorder %v650_v48, 1 }
 0x247   :  { %567 = vmatmul.mubr.bf16.vlgmr.msra.gmra.mxu0 %v533_v40  ;;  %608 = vmatmul.mubr.bf16.vlgmr.msra.gmra.mxu1 %v533_v40 }
 0x248   :  { %663 = vmatpush1.bf16.msra.mxu0 %v1910_v2  ;;  %704 = vmatpush1.bf16.msra.mxu1 %v1927_v8 }
 0x249   :  { %664 = vmatprep.subr.bf16.mxu0 %v1915_v4  ;;  %705 = vmatprep.subr.bf16.mxu1 %v1937_v11 }
 0x24a   :  { %694 = vmatprep.mubr.bf16.mxu0 %v1856_v3  ;;  %735 = vmatprep.mubr.bf16.mxu1 %v1856_v3 }
 0x24c   :  { %665 = vmatpush1.bf16.msra.mxu0 %v1919_v5  ;;  %706 = vmatpush1.bf16.msra.mxu1 %v1939_v12 }
 0x24d   :  { %666 = vmatprep.subr.bf16.mxu0 %v1923_v6  ;;  %707 = vmatprep.subr.bf16.mxu1 %v1947_v15 }
 0x250   :  { %667 = vmatpush1.bf16.msra.mxu0 %v1930_v9  ;;  %708 = vmatpush1.bf16.msra.mxu1 %v1951_v16 }
 0x251   :  { %668 = vmatprep.subr.bf16.mxu0 %v1934_v10  ;;  %709 = vmatprep.subr.bf16.mxu1 %v1954_v17 }
 0x254   :  { %669 = vmatpush1.bf16.msra.mxu0 %v1943_v13  ;;  %710 = vmatpush1.bf16.msra.mxu1 %v1963_v20 }
 0x255   :  { %670 = vmatprep.subr.bf16.mxu0 %v1945_v14  ;;  %711 = vmatprep.subr.bf16.mxu1 %v1966_v21 }
 0x258   :  { %671 = vmatpush1.bf16.msra.mxu0 %v1957_v18  ;;  %712 = vmatpush1.bf16.msra.mxu1 %v1975_v24 }
 0x259   :  { %672 = vmatprep.subr.bf16.mxu0 %v1960_v19  ;;  %713 = vmatprep.subr.bf16.mxu1 %v1978_v25 }
 0x25c   :  { %673 = vmatpush1.bf16.msra.mxu0 %v1968_v22  ;;  %714 = vmatpush1.bf16.msra.mxu1 %v1995_v30 }
 0x25d   :  { %674 = vmatprep.subr.bf16.mxu0 %v1971_v23  ;;  %715 = vmatprep.subr.bf16.mxu1 %v1998_v31 }
 0x260   :  { %675 = vmatpush1.bf16.msra.mxu0 %v1987_v27  ;;  %716 = vmatpush1.bf16.msra.mxu1 %v2009_v35 }
 0x261   :  { %676 = vmatprep.subr.bf16.mxu0 %v1992_v29  ;;  %717 = vmatprep.subr.bf16.mxu1 %v2012_v36 }
 0x264   :  { %677 = vmatpush1.bf16.msra.mxu0 %v2002_v33  ;;  %718 = vmatpush1.bf16.msra.mxu1 %v2020_v39 }
 0x265   :  { %790 = vmatprep.subr.bf16.mxu0 %v1908_v1  ;;  %831 = vmatprep.subr.bf16.mxu1 %v1925_v7 }
 0x307   :  { %v568_v42 = vpop.f32.mrf.mxu0  ;;  %v609_v26 = vpop.f32.mrf.mxu1 }
 0x308   :  { %v616_v43 = vadd.f32 %v568_v42, %v529_v52  ;;  %v618_v60 = vadd.f32 %v609_v26, %v531_v57 }
 0x309   :  { %v570_v44 = vpop.f32.mrf.mxu0  ;;  %v611_v45 = vpop.f32.mrf.mxu1 }
 0x30a   :  { %v1471_v46 = vmul.f32 -1.442695, %v616_v43  ;;  %v617_v47 = vadd.f32 %v570_v44, %v530_v41  ;;  %v619_v56 = vadd.f32 %v611_v45, %v532_v55 }
 0x30b   :  { %v572_v49 = vpop.f32.mrf.mxu0  ;;  %v613_v50 = vpop.f32.mrf.mxu1 }
 0x30c   :  { %1626 = vpow2.f32 %v1471_v46  ;;  %v1472_v51 = vmul.f32 -1.442695, %v617_v47  ;;  %v1473_v58 = vmul.f32 -1.442695, %v619_v56 }
 0x30d   :  { %v573_v53 = vpop.f32.mrf.mxu0  ;;  %v614_v34 = vpop.f32.mrf.mxu1 }
 0x30e   :  { %1628 = vpow2.f32 %v1472_v51 }
 0x30f   :  { %1630 = vpow2.f32 %v1473_v58 }
 0x319   :  { %v1627_v59 = vpop.eup %1626 }
 0x31a   :  { %v623_v62 = vadd.f32 1.0, %v1627_v59 }
 0x31b   :  { %v1629_v63 = vpop.eup %1628 }
 0x31c   :  { %1632 = vrcp.f32 %v623_v62  ;;  %v629_v28 = vadd.f32 1.0, %v1629_v63  ;;  %v1631_v32 = vpop.eup %1630 }
 0x31d   :  { %1634 = vtanh.f32 %v618_v60  ;;  %v636_v41 = vadd.f32 1.0, %v1631_v32  ;;  %v656_v32 = vld [vmem:[#allocation6 + $0x38] sm:$0xff] }
 0x31e   :  { %1636 = vrcp.f32 %v629_v28  ;;  %v659_v48 = vunpack.c.l.bf16 %v656_v32 }
 0x31f   :  { %1638 = vrcp.f32 %v636_v41 }
 0x329   :  { %v1633_v37 = vpop.eup %1632 }
 0x32a   :  { %v1635_v40 = vpop.eup %1634 }
 0x32b   :  { %v1637_v52 = vpop.eup %1636  ;;  %v640_v43 = vmul.f32 %v1635_v40, %v1633_v37  ;;  %v660_v37 = vunpack.c.h.bf16 %v656_v32 }
 0x32c   :  { %v639_v42 = vmul.f32 %v1637_v52, %v2112_v61  ;;  %v1639_v45 = vpop.eup %1638 }
 0x32e   :  { %v641_v44 = vadd.f32 %v640_v43, %v639_v42 }
 0x330   :  { %1640 = vtanh.f32 %v641_v44  ;;  %v2155_v26 = vsel %vm651_vm10, %v641_v44, %v2112_v61  ;;  %v655_v61 = vld [vmem:[#allocation6 + $0x30] sm:$0xff] }
 0x331   :  { %v658_v51 = vunpack.c.h.bf16 %v655_v61 }
 0x33d   :  { %v1641_v46 = vpop.eup %1640 }
 0x33e   :  { %v643_v47 = vmul.f32 %v1641_v46, %v1639_v45 }
 0x340   :  { %v2158_v49 = vsel %vm651_vm10, %v643_v47, %v2115_v38  ;;  %v657_v38 = vunpack.c.l.bf16 %v655_v61 }
 0x341   :  { %v661_v50 = vpack.c.bf16 %v2158_v49, %v2158_v49 }
 0x343   :  { %695 = vmatmul.mubr.bf16.vlgmr.msra.gmra.mxu0 %v661_v50  ;;  %736 = vmatmul.mubr.bf16.vlgmr.msra.gmra.mxu1 %v661_v50 }
 0x344   :  { %791 = vmatpush1.bf16.msra.mxu0 %v1910_v2  ;;  %832 = vmatpush1.bf16.msra.mxu1 %v1927_v8 }
 0x345   :  { %792 = vmatprep.subr.bf16.mxu0 %v1915_v4  ;;  %833 = vmatprep.subr.bf16.mxu1 %v1937_v11 }
 0x346   :  { %822 = vmatprep.mubr.bf16.mxu0 %v1856_v3  ;;  %863 = vmatprep.mubr.bf16.mxu1 %v1856_v3 }
 0x348   :  { %793 = vmatpush1.bf16.msra.mxu0 %v1919_v5  ;;  %834 = vmatpush1.bf16.msra.mxu1 %v1939_v12 }
 0x349   :  { %794 = vmatprep.subr.bf16.mxu0 %v1923_v6  ;;  %835 = vmatprep.subr.bf16.mxu1 %v1947_v15 }
 0x34c   :  { %795 = vmatpush1.bf16.msra.mxu0 %v1930_v9  ;;  %836 = vmatpush1.bf16.msra.mxu1 %v1951_v16 }
 0x34d   :  { %796 = vmatprep.subr.bf16.mxu0 %v1934_v10  ;;  %837 = vmatprep.subr.bf16.mxu1 %v1954_v17 }
 0x350   :  { %797 = vmatpush1.bf16.msra.mxu0 %v1943_v13  ;;  %838 = vmatpush1.bf16.msra.mxu1 %v1963_v20 }
 0x351   :  { %798 = vmatprep.subr.bf16.mxu0 %v1945_v14  ;;  %839 = vmatprep.subr.bf16.mxu1 %v1966_v21 }
 0x354   :  { %799 = vmatpush1.bf16.msra.mxu0 %v1957_v18  ;;  %840 = vmatpush1.bf16.msra.mxu1 %v1975_v24 }
 0x355   :  { %800 = vmatprep.subr.bf16.mxu0 %v1960_v19  ;;  %841 = vmatprep.subr.bf16.mxu1 %v1978_v25 }
 0x358   :  { %801 = vmatpush1.bf16.msra.mxu0 %v1968_v22  ;;  %842 = vmatpush1.bf16.msra.mxu1 %v1995_v30 }
 0x359   :  { %802 = vmatprep.subr.bf16.mxu0 %v1971_v23  ;;  %843 = vmatprep.subr.bf16.mxu1 %v1998_v31 }
 0x35c   :  { %803 = vmatpush1.bf16.msra.mxu0 %v1987_v27  ;;  %844 = vmatpush1.bf16.msra.mxu1 %v2009_v35 }
 0x35d   :  { %804 = vmatprep.subr.bf16.mxu0 %v1992_v29  ;;  %845 = vmatprep.subr.bf16.mxu1 %v2012_v36 }
 0x360   :  { %805 = vmatpush1.bf16.msra.mxu0 %v2002_v33  ;;  %846 = vmatpush1.bf16.msra.mxu1 %v2020_v39 }
 0x361   :  { %918 = vmatprep.subr.bf16.mxu0 %v1908_v1  ;;  %959 = vmatprep.subr.bf16.mxu1 %v1925_v7 }
 0x403   :  { %v696_v53 = vpop.f32.mrf.mxu0  ;;  %v737_v34 = vpop.f32.mrf.mxu1 }
 0x404   :  { %v744_v54 = vadd.f32 %v696_v53, %v657_v38  ;;  %v746_v42 = vadd.f32 %v737_v34, %v659_v48 }
 0x405   :  { %v698_v55 = vpop.f32.mrf.mxu0  ;;  %v739_v56 = vpop.f32.mrf.mxu1 }
 0x406   :  { %v1475_v57 = vmul.f32 -1.442695, %v744_v54  ;;  %v745_v58 = vadd.f32 %v698_v55, %v658_v51  ;;  %v747_v40 = vadd.f32 %v739_v56, %v660_v37  ;;  %v778_v54 = vpop.permute.xlu1 %777 }
 0x407   :  { %v700_v59 = vpop.f32.mrf.mxu0  ;;  %v741_v60 = vpop.f32.mrf.mxu1  ;;  %vm779_vm11 = vcmp.eq.s32.totalorder %v778_v54, 1  ;;  %v2251_v54 = vld [vmem:[#allocation9 + $0xe8] ss:$16 sps:$4 sm:$0xff]  }
 0x408   :  { %1642 = vpow2.f32 %v1475_v57  ;;  %v1476_v62 = vmul.f32 -1.442695, %v745_v58  ;;  %v1477_v52 = vmul.f32 -1.442695, %v747_v40 }
 0x409   :  { %v701_v63 = vpop.f32.mrf.mxu0  ;;  %v742_v28 = vpop.f32.mrf.mxu1 }
 0x40a   :  { %1644 = vpow2.f32 %v1476_v62 }
 0x40b   :  { %1646 = vpow2.f32 %v1477_v52 }
 0x415   :  { %v1643_v41 = vpop.eup %1642 }
 0x416   :  { %v751_v43 = vadd.f32 1.0, %v1643_v41 }
 0x417   :  { %v1645_v44 = vpop.eup %1644 }
 0x418   :  { %1648 = vrcp.f32 %v751_v43  ;;  %v757_v45 = vadd.f32 1.0, %v1645_v44  ;;  %v1647_v46 = vpop.eup %1646  ;;  %v906_v44 = vpop.permute.xlu0 %905 }
 0x419   :  { %1650 = vtanh.f32 %v746_v42  ;;  %v764_v38 = vadd.f32 1.0, %v1647_v46  ;;  %vm907_vm12 = vcmp.eq.s32.totalorder %v906_v44, 1 }
 0x41a   :  { %1652 = vrcp.f32 %v757_v45 }
 0x41b   :  { %1654 = vrcp.f32 %v764_v38 }
 0x425   :  { %v1649_v47 = vpop.eup %1648 }
 0x426   :  { %v1651_v50 = vpop.eup %1650 }
 0x427   :  { %v1653_v61 = vpop.eup %1652  ;;  %v768_v51 = vmul.f32 %v1651_v50, %v1649_v47 }
 0x428   :  { %v767_v53 = vmul.f32 %v1653_v61, %v2155_v26  ;;  %v1655_v56 = vpop.eup %1654 }
 0x42a   :  { %v769_v55 = vadd.f32 %v768_v51, %v767_v53  ;;  %v2248_v53 = vld [vmem:[#allocation9 + $0xe0] ss:$16 sps:$4 sm:$0xff]  }
 0x42c   :  { %1656 = vtanh.f32 %v769_v55  ;;  %v2198_v34 = vsel %vm779_vm11, %v769_v55, %v2155_v26  ;;  %v2254_v55 = vld [vmem:[#allocation9 + $0xc4] ss:$16 sps:$4 sm:$0xff]  }
 0x439   :  { %v1657_v57 = vpop.eup %1656 }
 0x43a   :  { %v771_v58 = vmul.f32 %v1657_v57, %v1655_v56  ;;  %v2262_v56 = vld [vmem:[#allocation9 + $0xc0] ss:$16 sps:$4 sm:$0xff]   ;;  %v2265_v57 = vld [vmem:[#allocation9 + $0xc8] ss:$16 sps:$4 sm:$0xff]  }
 0x43c   :  { %v2201_v59 = vsel %vm779_vm11, %v771_v58, %v2158_v49  ;;  %v2268_v58 = vld [vmem:[#allocation9 + $0xa4] ss:$16 sps:$4 sm:$0xff]  }
 0x43d   :  { %v789_v60 = vpack.c.bf16 %v2201_v59, %v2201_v59 }
 0x43f   :  { %823 = vmatmul.mubr.bf16.vlgmr.msra.gmra.mxu0 %v789_v60  ;;  %864 = vmatmul.mubr.bf16.vlgmr.msra.gmra.mxu1 %v789_v60  ;;  %v2274_v60 = vld [vmem:[#allocation9 + $0xa0] ss:$16 sps:$4 sm:$0xff]  }
 0x440   :  { %919 = vmatpush1.bf16.msra.mxu0 %v1910_v2  ;;  %960 = vmatpush1.bf16.msra.mxu1 %v1927_v8  ;;  %v783_v2 = vld [vmem:[#allocation6 + $0x40] sm:$0xff] }
 0x441   :  { %920 = vmatprep.subr.bf16.mxu0 %v1915_v4  ;;  %961 = vmatprep.subr.bf16.mxu1 %v1937_v11  ;;  %v785_v4 = vunpack.c.l.bf16 %v783_v2 }
 0x442   :  { %950 = vmatprep.mubr.bf16.mxu0 %v1856_v3  ;;  %991 = vmatprep.mubr.bf16.mxu1 %v1856_v3 }
 0x444   :  { %921 = vmatpush1.bf16.msra.mxu0 %v1919_v5  ;;  %962 = vmatpush1.bf16.msra.mxu1 %v1939_v12  ;;  %v786_v5 = vunpack.c.h.bf16 %v783_v2  ;;  %v2277_v2 = vld [vmem:[#allocation9 + $0xa8] ss:$16 sps:$4 sm:$0xff]  }
 0x445   :  { %922 = vmatprep.subr.bf16.mxu0 %v1923_v6  ;;  %963 = vmatprep.subr.bf16.mxu1 %v1947_v15 }
 0x448   :  { %923 = vmatpush1.bf16.msra.mxu0 %v1930_v9  ;;  %964 = vmatpush1.bf16.msra.mxu1 %v1951_v16 }
 0x449   :  { %924 = vmatprep.subr.bf16.mxu0 %v1934_v10  ;;  %965 = vmatprep.subr.bf16.mxu1 %v1954_v17 }
 0x44c   :  { %925 = vmatpush1.bf16.msra.mxu0 %v1943_v13  ;;  %966 = vmatpush1.bf16.msra.mxu1 %v1963_v20 }
 0x44d   :  { %926 = vmatprep.subr.bf16.mxu0 %v1945_v14  ;;  %967 = vmatprep.subr.bf16.mxu1 %v1966_v21 }
 0x450   :  { %927 = vmatpush1.bf16.msra.mxu0 %v1957_v18  ;;  %968 = vmatpush1.bf16.msra.mxu1 %v1975_v24 }
 0x451   :  { %928 = vmatprep.subr.bf16.mxu0 %v1960_v19  ;;  %969 = vmatprep.subr.bf16.mxu1 %v1978_v25  ;;  %v784_v19 = vld [vmem:[#allocation6 + $0x48] sm:$0xff] }
 0x454   :  { %929 = vmatpush1.bf16.msra.mxu0 %v1968_v22  ;;  %970 = vmatpush1.bf16.msra.mxu1 %v1995_v30  ;;  %v787_v22 = vunpack.c.l.bf16 %v784_v19 }
 0x455   :  { %930 = vmatprep.subr.bf16.mxu0 %v1971_v23  ;;  %971 = vmatprep.subr.bf16.mxu1 %v1998_v31 }
 0x458   :  { %931 = vmatpush1.bf16.msra.mxu0 %v1987_v27  ;;  %972 = vmatpush1.bf16.msra.mxu1 %v2009_v35 }
 0x459   :  { %932 = vmatprep.subr.bf16.mxu0 %v1992_v29  ;;  %973 = vmatprep.subr.bf16.mxu1 %v2012_v36 }
 0x45c   :  { %933 = vmatpush1.bf16.msra.mxu0 %v2002_v33  ;;  %974 = vmatpush1.bf16.msra.mxu1 %v2020_v39 }
 0x45d   :  { %1046 = vmatprep.subr.bf16.mxu0 %v1908_v1  ;;  %1087 = vmatprep.subr.bf16.mxu1 %v1925_v7  ;;  %v788_v1 = vunpack.c.h.bf16 %v784_v19 }
 0x4ff   :  { %v824_v6 = vpop.f32.mrf.mxu0  ;;  %v865_v8 = vpop.f32.mrf.mxu1 }
 0x500   :  { %v872_v9 = vadd.f32 %v824_v6, %v785_v4  ;;  %v874_v62 = vadd.f32 %v865_v8, %v787_v22  ;;  %v2280_v4 = vld [vmem:[#allocation9 + $0x84] ss:$16 sps:$4 sm:$0xff]   ;;  %v2286_v6 = vld [vmem:[#allocation9 + $0x80] ss:$16 sps:$4 sm:$0xff]  }
 0x501   :  { %v826_v10 = vpop.f32.mrf.mxu0  ;;  %v867_v11 = vpop.f32.mrf.mxu1  ;;  %v2290_v8 = vld [vmem:[#allocation9 + $0x64] ss:$16 sps:$4 sm:$0xff]  }
 0x502   :  { %v1479_v12 = vmul.f32 -1.442695, %v872_v9  ;;  %v873_v13 = vadd.f32 %v826_v10, %v786_v5  ;;  %v875_v7 = vadd.f32 %v867_v11, %v788_v1  ;;  %v2283_v5 = vld [vmem:[#allocation9 + $0x8c] ss:$16 sps:$4 sm:$0xff]   ;;  %v2294_v9 = vld [vmem:[#allocation9 + $0x60] ss:$16 sps:$4 sm:$0xff]  }
 0x503   :  { %v828_v14 = vpop.f32.mrf.mxu0  ;;  %v869_v15 = vpop.f32.mrf.mxu1  ;;  %v2298_v10 = vld [vmem:[#allocation9 + $0x44] ss:$16 sps:$4 sm:$0xff]   ;;  %v2302_v11 = vld [vmem:[#allocation9 + $0x40] ss:$16 sps:$4 sm:$0xff]  }
 0x504   :  { %1658 = vpow2.f32 %v1479_v12  ;;  %v1480_v16 = vmul.f32 -1.442695, %v873_v13  ;;  %v1481_v26 = vmul.f32 -1.442695, %v875_v7 }
 0x505   :  { %v829_v17 = vpop.f32.mrf.mxu0  ;;  %v870_v18 = vpop.f32.mrf.mxu1 }
 0x506   :  { %1660 = vpow2.f32 %v1480_v16  ;;  %v912_v16 = vld [vmem:[#allocation6 + $0x58] sm:$0xff] }
 0x507   :  { %1662 = vpow2.f32 %v1481_v26  ;;  %v916_v17 = vunpack.c.h.bf16 %v912_v16  ;;  %v915_v19 = vunpack.c.l.bf16 %v912_v16 }
 0x511   :  { %v1659_v49 = vpop.eup %1658 }
 0x512   :  { %v879_v63 = vadd.f32 1.0, %v1659_v49 }
 0x513   :  { %v1661_v28 = vpop.eup %1660 }
 0x514   :  { %1664 = vrcp.f32 %v879_v63  ;;  %v885_v32 = vadd.f32 1.0, %v1661_v28  ;;  %v1663_v37 = vpop.eup %1662 }
 0x515   :  { %1666 = vtanh.f32 %v874_v62  ;;  %v892_v41 = vadd.f32 1.0, %v1663_v37 }
 0x516   :  { %1668 = vrcp.f32 %v885_v32 }
 0x517   :  { %1670 = vrcp.f32 %v892_v41  ;;  %v1034_v41 = vpop.permute.xlu1 %1033 }
 0x518   :  { %vm1035_vm13 = vcmp.eq.s32.totalorder %v1034_v41, 1 }
 0x521   :  { %v1665_v40 = vpop.eup %1664 }
 0x522   :  { %v1667_v48 = vpop.eup %1666 }
 0x523   :  { %v1669_v52 = vpop.eup %1668  ;;  %v896_v42 = vmul.f32 %v1667_v48, %v1665_v40 }
 0x524   :  { %v895_v43 = vmul.f32 %v1669_v52, %v2198_v34  ;;  %v1671_v47 = vpop.eup %1670 }
 0x526   :  { %v897_v45 = vadd.f32 %v896_v42, %v895_v43 }
 0x528   :  { %1672 = vtanh.f32 %v897_v45  ;;  %v2241_v46 = vsel %vm907_vm12, %v897_v45, %v2198_v34  ;;  %v2257_v34 = vld [vmem:[#allocation9 + $0xcc] ss:$16 sps:$4 sm:$0xff]  }
 0x535   :  { %v1673_v50 = vpop.eup %1672 }
 0x536   :  { %v899_v61 = vmul.f32 %v1673_v50, %v1671_v47 }
 0x538   :  { %v2244_v38 = vsel %vm907_vm12, %v899_v61, %v2201_v59  ;;  %v2271_v59 = vld [vmem:[#allocation9 + $0xac] ss:$16 sps:$4 sm:$0xff]  }
 0x539   :  { %v917_v51 = vpack.c.bf16 %v2244_v38, %v2244_v38 }
 0x53b   :  { %951 = vmatmul.mubr.bf16.vlgmr.msra.gmra.mxu0 %v917_v51  ;;  %992 = vmatmul.mubr.bf16.vlgmr.msra.gmra.mxu1 %v917_v51  ;;  %v1744_v51 = vld [vmem:[#allocation9 + $0x4c] ss:$16 sps:$4 sm:$0xff]  }
 0x53c   :  { %1047 = vmatpush1.bf16.msra.mxu0 %v2248_v53  ;;  %1088 = vmatpush1.bf16.msra.mxu1 %v2251_v54 }
 0x53d   :  { %1048 = vmatprep.subr.bf16.mxu0 %v2254_v55  ;;  %1089 = vmatprep.subr.bf16.mxu1 %v2257_v34 }
 0x53e   :  { %1078 = vmatprep.mubr.bf16.mxu0 %v1856_v3  ;;  %1119 = vmatprep.mubr.bf16.mxu1 %v1856_v3 }
 0x540   :  { %1049 = vmatpush1.bf16.msra.mxu0 %v2262_v56  ;;  %1090 = vmatpush1.bf16.msra.mxu1 %v2265_v57 }
 0x541   :  { %1050 = vmatprep.subr.bf16.mxu0 %v2268_v58  ;;  %1091 = vmatprep.subr.bf16.mxu1 %v2271_v59 }
 0x544   :  { %1051 = vmatpush1.bf16.msra.mxu0 %v2274_v60  ;;  %1092 = vmatpush1.bf16.msra.mxu1 %v2277_v2 }
 0x545   :  { %1052 = vmatprep.subr.bf16.mxu0 %v2280_v4  ;;  %1093 = vmatprep.subr.bf16.mxu1 %v2283_v5 }
 0x548   :  { %1053 = vmatpush1.bf16.msra.mxu0 %v2286_v6  ;;  %1094 = vmatpush1.bf16.msra.mxu1 %v1963_v20  ;;  %v1739_v20 = vld [vmem:[#allocation9 + $0xe4] ss:$16 sps:$4 sm:$0xff]  }
 0x549   :  { %1054 = vmatprep.subr.bf16.mxu0 %v2290_v8  ;;  %1095 = vmatprep.subr.bf16.mxu1 %v1966_v21  ;;  %v1740_v21 = vld [vmem:[#allocation9 + $0xec] ss:$16 sps:$4 sm:$0xff]  }
 0x54c   :  { %1055 = vmatpush1.bf16.msra.mxu0 %v2294_v9  ;;  %1096 = vmatpush1.bf16.msra.mxu1 %v1975_v24  ;;  %v911_v24 = vld [vmem:[#allocation6 + $0x50] sm:$0xff] }
 0x54d   :  { %1056 = vmatprep.subr.bf16.mxu0 %v2298_v10  ;;  %1097 = vmatprep.subr.bf16.mxu1 %v1978_v25  ;;  %v914_v25 = vunpack.c.h.bf16 %v911_v24 }
 0x550   :  { %1057 = vmatpush1.bf16.msra.mxu0 %v2302_v11  ;;  %1098 = vmatpush1.bf16.msra.mxu1 %v1995_v30 }
 0x551   :  { %1058 = vmatprep.subr.bf16.mxu0 %v1971_v23  ;;  %1099 = vmatprep.subr.bf16.mxu1 %v1998_v31  ;;  %v913_v23 = vunpack.c.l.bf16 %v911_v24 }
 0x554   :  { %1059 = vmatpush1.bf16.msra.mxu0 %v1987_v27  ;;  %1100 = vmatpush1.bf16.msra.mxu1 %v2009_v35 }
 0x555   :  { %1060 = vmatprep.subr.bf16.mxu0 %v1992_v29  ;;  %1101 = vmatprep.subr.bf16.mxu1 %v2012_v36 }
 0x558   :  { %1061 = vmatpush1.bf16.msra.mxu0 %v2002_v33  ;;  %1102 = vmatpush1.bf16.msra.mxu1 %v2020_v39 }
 0x559   :  { %1174 = vmatprep.subr.bf16.mxu0 %v1739_v20  ;;  %1215 = vmatprep.subr.bf16.mxu1 %v1740_v21 }
 0x5fb   :  { %v952_v30 = vpop.f32.mrf.mxu0  ;;  %v993_v31 = vpop.f32.mrf.mxu1 }
 0x5fc   :  { %v1000_v27 = vadd.f32 %v952_v30, %v913_v23  ;;  %v1002_v22 = vadd.f32 %v993_v31, %v915_v19 }
 0x5fd   :  { %v954_v12 = vpop.f32.mrf.mxu0  ;;  %v995_v35 = vpop.f32.mrf.mxu1 }
 0x5fe   :  { %v1483_v13 = vmul.f32 -1.442695, %v1000_v27  ;;  %v1001_v29 = vadd.f32 %v954_v12, %v914_v25  ;;  %v1003_v18 = vadd.f32 %v995_v35, %v916_v17  ;;  %v1040_v27 = vld [vmem:[#allocation6 + $0x68] sm:$0xff] }
 0x5ff   :  { %v956_v14 = vpop.f32.mrf.mxu0  ;;  %v997_v36 = vpop.f32.mrf.mxu1  ;;  %v1044_v12 = vunpack.c.h.bf16 %v1040_v27 }
 0x600   :  { %1674 = vpow2.f32 %v1483_v13  ;;  %v1484_v33 = vmul.f32 -1.442695, %v1001_v29  ;;  %v1485_v1 = vmul.f32 -1.442695, %v1003_v18  ;;  %v1043_v13 = vunpack.c.l.bf16 %v1040_v27 }
 0x601   :  { %v957_v15 = vpop.f32.mrf.mxu0  ;;  %v998_v39 = vpop.f32.mrf.mxu1 }
 0x602   :  { %1676 = vpow2.f32 %v1484_v33 }
 0x603   :  { %1678 = vpow2.f32 %v1485_v1 }
 0x60d   :  { %v1675_v7 = vpop.eup %1674 }
 0x60e   :  { %v1007_v26 = vadd.f32 1.0, %v1675_v7  ;;  %v1162_v7 = vpop.permute.xlu0 %1161 }
 0x60f   :  { %v1677_v49 = vpop.eup %1676  ;;  %vm1163_vm14 = vcmp.eq.s32.totalorder %v1162_v7, 1 }
 0x610   :  { %1680 = vrcp.f32 %v1007_v26  ;;  %v1013_v62 = vadd.f32 1.0, %v1677_v49  ;;  %v1679_v63 = vpop.eup %1678 }
 0x611   :  { %1682 = vtanh.f32 %v1002_v22  ;;  %v1020_v40 = vadd.f32 1.0, %v1679_v63 }
 0x612   :  { %1684 = vrcp.f32 %v1013_v62 }
 0x613   :  { %1686 = vrcp.f32 %v1020_v40 }
 0x61d   :  { %v1681_v28 = vpop.eup %1680 }
 0x61e   :  { %v1683_v32 = vpop.eup %1682 }
 0x61f   :  { %v1685_v37 = vpop.eup %1684  ;;  %v1024_v48 = vmul.f32 %v1683_v32, %v1681_v28 }
 0x620   :  { %v1023_v52 = vmul.f32 %v1685_v37, %v2241_v46  ;;  %v1687_v44 = vpop.eup %1686 }
 0x622   :  { %v1025_v42 = vadd.f32 %v1024_v48, %v1023_v52  ;;  %v1167_v48 = vld [vmem:[#allocation6 + $0x70] sm:$0xff] }
 0x623   :  { %v1169_v52 = vunpack.c.l.bf16 %v1167_v48  ;;  %v1170_v41 = vunpack.c.h.bf16 %v1167_v48 }
 0x624   :  { %1688 = vtanh.f32 %v1025_v42  ;;  %v2316_v43 = vsel %vm1035_vm13, %v1025_v42, %v2241_v46  ;;  %v1741_v46 = vld [vmem:[#allocation9 + $0x88] ss:$16 sps:$4 sm:$0xff]  }
 0x631   :  { %v1689_v45 = vpop.eup %1688 }
 0x632   :  { %v1027_v47 = vmul.f32 %v1689_v45, %v1687_v44 }
 0x634   :  { %v2319_v50 = vsel %vm1035_vm13, %v1027_v47, %v2244_v38  ;;  %v1743_v38 = vld [vmem:[#allocation9 + $0x68] ss:$16 sps:$4 sm:$0xff]  }
 0x635   :  { %v1045_v61 = vpack.c.bf16 %v2319_v50, %v2319_v50 }
 0x637   :  { %1079 = vmatmul.mubr.bf16.vlgmr.msra.gmra.mxu0 %v1045_v61  ;;  %1120 = vmatmul.mubr.bf16.vlgmr.msra.gmra.mxu1 %v1045_v61 }
 0x638   :  { %1175 = vmatpush1.bf16.msra.mxu0 %v2248_v53  ;;  %1216 = vmatpush1.bf16.msra.mxu1 %v2251_v54  ;;  %v1745_v53 = vld [vmem:[#allocation9 + $0x48] ss:$16 sps:$4 sm:$0xff]   ;;  %v1746_v54 = vld [vmem:[#allocation9 + $0x24] ss:$16 sps:$4 sm:$0xff]  }
 0x639   :  { %1176 = vmatprep.subr.bf16.mxu0 %v2254_v55  ;;  %1217 = vmatprep.subr.bf16.mxu1 %v2257_v34  ;;  %v1747_v55 = vld [vmem:[#allocation9 + $0x2c] ss:$16 sps:$4 sm:$0xff]   ;;  %v1748_v34 = vld [vmem:[#allocation9 + $0x20] ss:$16 sps:$4 sm:$0xff]  }
 0x63a   :  { %1206 = vmatprep.mubr.bf16.mxu0 %v1856_v3  ;;  %1247 = vmatprep.mubr.bf16.mxu1 %v1856_v3  ;;  %v1742_v3 = vld [vmem:[#allocation9 + $0x6c] ss:$16 sps:$4 sm:$0xff]  }
 0x63c   :  { %1177 = vmatpush1.bf16.msra.mxu0 %v2262_v56  ;;  %1218 = vmatpush1.bf16.msra.mxu1 %v2265_v57  ;;  %v1749_v56 = vld [vmem:[#allocation9 + $0x28] ss:$16 sps:$4 sm:$0xff]   ;;  %v1750_v57 = vld [vmem:[#allocation9 + $0x4] ss:$16 sps:$4 sm:$0xff]  }
 0x63d   :  { %1178 = vmatprep.subr.bf16.mxu0 %v2268_v58  ;;  %1219 = vmatprep.subr.bf16.mxu1 %v2271_v59  ;;  %v1751_v58 = vld [vmem:[#allocation9 + $0xc] ss:$16 sps:$4 sm:$0xff]   ;;  %v1752_v59 = vld [vmem:[#allocation9] ss:$16 sps:$4 sm:$0xff]  }
 0x640   :  { %1179 = vmatpush1.bf16.msra.mxu0 %v2274_v60  ;;  %1220 = vmatpush1.bf16.msra.mxu1 %v2277_v2  ;;  %v1753_v60 = vld [vmem:[#allocation9 + $0x8] ss:$16 sps:$4 sm:$0xff]   ;;  %v1039_v2 = vld [vmem:[#allocation6 + $0x60] sm:$0xff] }
 0x641   :  { %1180 = vmatprep.subr.bf16.mxu0 %v2280_v4  ;;  %1221 = vmatprep.subr.bf16.mxu1 %v2283_v5  ;;  %v1041_v4 = vunpack.c.l.bf16 %v1039_v2  ;;  %v1042_v5 = vunpack.c.h.bf16 %v1039_v2 }
 0x644   :  { %1181 = vmatpush1.bf16.msra.mxu0 %v2286_v6  ;;  %1222 = vmatpush1.bf16.msra.mxu1 %v1741_v46 }
 0x645   :  { %1182 = vmatprep.subr.bf16.mxu0 %v2290_v8  ;;  %1223 = vmatprep.subr.bf16.mxu1 %v1742_v3 }
 0x648   :  { %1183 = vmatpush1.bf16.msra.mxu0 %v2294_v9  ;;  %1224 = vmatpush1.bf16.msra.mxu1 %v1743_v38 }
 0x649   :  { %1184 = vmatprep.subr.bf16.mxu0 %v2298_v10  ;;  %1225 = vmatprep.subr.bf16.mxu1 %v1744_v51 }
 0x64c   :  { %1185 = vmatpush1.bf16.msra.mxu0 %v2302_v11  ;;  %1226 = vmatpush1.bf16.msra.mxu1 %v1745_v53 }
 0x64d   :  { %1186 = vmatprep.subr.bf16.mxu0 %v1746_v54  ;;  %1227 = vmatprep.subr.bf16.mxu1 %v1747_v55 }
 0x650   :  { %1187 = vmatpush1.bf16.msra.mxu0 %v1748_v34  ;;  %1228 = vmatpush1.bf16.msra.mxu1 %v1749_v56 }
 0x651   :  { %1188 = vmatprep.subr.bf16.mxu0 %v1750_v57  ;;  %1229 = vmatprep.subr.bf16.mxu1 %v1751_v58 }
 0x654   :  { %1189 = vmatpush1.bf16.msra.mxu0 %v1752_v59  ;;  %1230 = vmatpush1.bf16.msra.mxu1 %v1753_v60 }
 0x6f7   :  { %v1080_v6 = vpop.f32.mrf.mxu0  ;;  %v1121_v8 = vpop.f32.mrf.mxu1 }
 0x6f8   :  { %v1128_v9 = vadd.f32 %v1080_v6, %v1041_v4  ;;  %v1130_v36 = vadd.f32 %v1121_v8, %v1043_v13 }
 0x6f9   :  { %v1082_v10 = vpop.f32.mrf.mxu0  ;;  %v1123_v11 = vpop.f32.mrf.mxu1 }
 0x6fa   :  { %v1487_v20 = vmul.f32 -1.442695, %v1128_v9  ;;  %v1129_v21 = vadd.f32 %v1082_v10, %v1042_v5  ;;  %v1131_v35 = vadd.f32 %v1123_v11, %v1044_v12  ;;  %v1290_v11 = vpop.permute.xlu1 %1289 }
 0x6fb   :  { %v1084_v24 = vpop.f32.mrf.mxu0  ;;  %v1125_v23 = vpop.f32.mrf.mxu1  ;;  %vm1291_vm15 = vcmp.eq.s32.totalorder %v1290_v11, 1 }
 0x6fc   :  { %1690 = vpow2.f32 %v1487_v20  ;;  %v1488_v25 = vmul.f32 -1.442695, %v1129_v21  ;;  %v1489_v29 = vmul.f32 -1.442695, %v1131_v35 }
 0x6fd   :  { %v1085_v30 = vpop.f32.mrf.mxu0  ;;  %v1126_v31 = vpop.f32.mrf.mxu1 }
 0x6fe   :  { %1692 = vpow2.f32 %v1488_v25 }
 0x6ff   :  { %1694 = vpow2.f32 %v1489_v29 }
 0x709   :  { %v1691_v14 = vpop.eup %1690 }
 0x70a   :  { %v1135_v33 = vadd.f32 1.0, %v1691_v14 }
 0x70b   :  { %v1693_v15 = vpop.eup %1692 }
 0x70c   :  { %1696 = vrcp.f32 %v1135_v33  ;;  %v1141_v39 = vadd.f32 1.0, %v1693_v15  ;;  %v1695_v16 = vpop.eup %1694 }
 0x70d   :  { %1698 = vtanh.f32 %v1130_v36  ;;  %v1148_v1 = vadd.f32 1.0, %v1695_v16 }
 0x70e   :  { %1700 = vrcp.f32 %v1141_v39 }
 0x70f   :  { %1702 = vrcp.f32 %v1148_v1 }
 0x719   :  { %v1697_v17 = vpop.eup %1696 }
 0x71a   :  { %v1699_v18 = vpop.eup %1698 }
 0x71b   :  { %v1701_v19 = vpop.eup %1700  ;;  %v1152_v22 = vmul.f32 %v1699_v18, %v1697_v17 }
 0x71c   :  { %v1151_v26 = vmul.f32 %v1701_v19, %v2316_v43  ;;  %v1703_v63 = vpop.eup %1702 }
 0x71e   :  { %v1153_v49 = vadd.f32 %v1152_v22, %v1151_v26 }
 0x720   :  { %1704 = vtanh.f32 %v1153_v49  ;;  %v1165_v62 = vsel %vm1163_vm14, %v1153_v49, %v2316_v43 }
 0x72d   :  { %v1705_v28 = vpop.eup %1704 }
 0x72e   :  { %v1155_v32 = vmul.f32 %v1705_v28, %v1703_v63 }
 0x730   :  { %v1164_v37 = vsel %vm1163_vm14, %v1155_v32, %v2319_v50  ;;  %v1168_v50 = vld [vmem:[#allocation6 + $0x78] sm:$0xff] }
 0x731   :  { %v1173_v40 = vpack.c.bf16 %v1164_v37, %v1164_v37  ;;  %v1172_v55 = vunpack.c.h.bf16 %v1168_v50  ;;  %v1171_v56 = vunpack.c.l.bf16 %v1168_v50 }
 0x733   :  { %1207 = vmatmul.mubr.bf16.vlgmr.msra.gmra.mxu0 %v1173_v40  ;;  %1248 = vmatmul.mubr.bf16.vlgmr.msra.gmra.mxu1 %v1173_v40 }
 0x7f3   :  { %v1208_v42 = vpop.f32.mrf.mxu0  ;;  %v1249_v44 = vpop.f32.mrf.mxu1 }
 0x7f4   :  { %v1256_v45 = vadd.f32 %v1208_v42, %v1169_v52  ;;  %v1258_v59 = vadd.f32 %v1249_v44, %v1171_v56 }
 0x7f5   :  { %v1210_v47 = vpop.f32.mrf.mxu0  ;;  %v1251_v61 = vpop.f32.mrf.mxu1 }
 0x7f6   :  { %v1491_v46 = vmul.f32 -1.442695, %v1256_v45  ;;  %v1257_v3 = vadd.f32 %v1210_v47, %v1170_v41  ;;  %v1259_v34 = vadd.f32 %v1251_v61, %v1172_v55 }
 0x7f7   :  { %v1212_v38 = vpop.f32.mrf.mxu0  ;;  %v1253_v43 = vpop.f32.mrf.mxu1 }
 0x7f8   :  { %1706 = vpow2.f32 %v1491_v46  ;;  %v1492_v51 = vmul.f32 -1.442695, %v1257_v3  ;;  %v1493_v57 = vmul.f32 -1.442695, %v1259_v34 }
 0x7f9   :  { %v1213_v53 = vpop.f32.mrf.mxu0  ;;  %v1254_v54 = vpop.f32.mrf.mxu1 }
 0x7fa   :  { %1708 = vpow2.f32 %v1492_v51 }
 0x7fb   :  { %1710 = vpow2.f32 %v1493_v57 }
 0x805   :  { %v1707_v58 = vpop.eup %1706 }
 0x806   :  { %v1263_v60 = vadd.f32 1.0, %v1707_v58 }
 0x807   :  { %v1709_v2 = vpop.eup %1708 }
 0x808   :  { %1712 = vrcp.f32 %v1263_v60  ;;  %v1269_v4 = vadd.f32 1.0, %v1709_v2  ;;  %v1711_v5 = vpop.eup %1710 }
 0x809   :  { %1714 = vtanh.f32 %v1258_v59  ;;  %v1276_v10 = vadd.f32 1.0, %v1711_v5 }
 0x80a   :  { %1716 = vrcp.f32 %v1269_v4 }
 0x80b   :  { %1718 = vrcp.f32 %v1276_v10 }
 0x815   :  { %v1713_v6 = vpop.eup %1712 }
 0x816   :  { %v1715_v8 = vpop.eup %1714 }
 0x817   :  { %v1717_v9 = vpop.eup %1716  ;;  %v1280_v20 = vmul.f32 %v1715_v8, %v1713_v6 }
 0x818   :  { %v1279_v21 = vmul.f32 %v1717_v9, %v1165_v62  ;;  %v1719_v25 = vpop.eup %1718 }
 0x81a   :  { %v1281_v24 = vadd.f32 %v1280_v20, %v1279_v21 }
 0x81c   :  { %1720 = vtanh.f32 %v1281_v24  ;;  %v1293_v23 = vsel %vm1291_vm15, %v1281_v24, %v1165_v62 }
 0x81d   :  { %1295 = vst [vmem:[#allocation3] sm:$0xff] %v1293_v23 }
 0x829   :  { %v1721_v30 = vpop.eup %1720 }
 0x82a   :  { %v1283_v31 = vmul.f32 %v1721_v30, %v1719_v25 }
 0x82c   :  { %v1292_v27 = vsel %vm1291_vm15, %v1283_v31, %v1164_v37 }
 0x82d   :  { %1294 = vst [vmem:[#allocation2] sm:$0xff] %v1292_v27 }
 0x82e PF:  { %1513 = vmatprep.subr.bf16.mxu0 %v1855_v0  ;;  %v1754_v12 = vld [vmem:[#allocation11 + $0x38] sm:$0xff]   ;;  %vm1857_vm0 = vmmov 0   ;;  %v1755_v35 = vld [vmem:[#allocation11 + $0x30] sm:$0xff]   ;;  %v1756_v13 = vld [vmem:[#allocation11 + $0x28] sm:$0xff]   ;;  %s1858_s17 = smov [#allocation12]  }
 0x82f   :  { %1529 = vmatprep.mubr.msk.bf16.mxu0 %vm1857_vm0, %v1855_v0  ;;  %1514 = vmatpush3.bf16.msra.mxu0 %v1754_v12  ;;  %v1757_v29 = vld [vmem:[#allocation11 + $0x20] sm:$0xff]   ;;  %v1758_v14 = vld [vmem:[#allocation11 + $0x18] sm:$0xff]   ;;  %v1759_v36 = vld [vmem:[#allocation11 + $0x10] sm:$0xff]   ;;  %s1419_s18 = sshll.u32 %s1858_s17, 4  ;;  %s1420_s18 = int_to_ptr.vmem [resolvable:$true] %s1419_s18 }
 0x830   :  { %1515 = vmatprep.subr.bf16.mxu0 %v1855_v0  ;;  %v1760_v33 = vld [vmem:[#allocation11 + $0x8] sm:$0xff]   ;;  %v1761_v15 = vld [vmem:[#allocation11] sm:$0xff]   ;;  %v1495_v17 = vld [vmem:[%s2365_s5] ss:$0 sm:$0xff]  ;;  %s1822_s19 = scalar_lea.vmem %s1420_s18, 128  ;;  %p1827_p3 = scmp.lt.s32.totalorder %s1420_s18, %s1420_s18 }
 0x831   :  { %p1823_p2 = scmp.ne.s32.totalorder %s1420_s18, %s1822_s19  ;;  %p1828_p4 = scmp.lt.s32.totalorder %s1822_s19, %s1822_s19 }
 0x833   :  { %1516 = vmatpush3.bf16.msra.mxu0 %v1755_v35  ;;  %p1829_p5 = por %p1828_p4, %p1827_p3 }
 0x834   :  { %1517 = vmatprep.subr.bf16.mxu0 %v1855_v0  ;;  %v1299_v39 = vld [vmem:[#allocation2] sm:$0xff] }
 0x835   :  { %v1300_v16 = vpack.c.bf16 %v1299_v39, %v1299_v39  ;;  %p1830_p6 = pnand %p1829_p5, %p1823_p2 }
 0x837   :  { %1518 = vmatpush3.bf16.msra.mxu0 %v1756_v13 }
 0x838   :  { %1519 = vmatprep.subr.bf16.mxu0 %v1855_v0 }
 0x83b   :  { %1520 = vmatpush3.bf16.msra.mxu0 %v1757_v29 }
 0x83c   :  { %1521 = vmatprep.subr.bf16.mxu0 %v1855_v0 }
 0x83f   :  { %1522 = vmatpush3.bf16.msra.mxu0 %v1758_v14 }
 0x840   :  { %1523 = vmatprep.subr.bf16.mxu0 %v1855_v0 }
 0x843   :  { %1524 = vmatpush3.bf16.msra.mxu0 %v1759_v36 }
 0x844   :  { %1525 = vmatprep.subr.bf16.mxu0 %v1855_v0 }
 0x847   :  { %1526 = vmatpush3.bf16.msra.mxu0 %v1760_v33 }
 0x848   :  { %1527 = vmatprep.subr.bf16.mxu0 %v1855_v0 }
 0x84b   :  { %1528 = vmatpush3.bf16.msra.mxu0 %v1761_v15 }
 0x84e   :  { %1530 = vmatmul.mubr.bf16.vlgmr.msra.gmra.mxu0 %v1300_v16 }
 0x90e   :  { %v1406_v18 = vpop.f32.mrf.mxu0 }
 0x90f   :  { %v1407_v19 = vadd.f32 %v1495_v17, %v1406_v18 }
 0x910   :  { %v1531_v1 = vpop.f32.mrf.mxu0 }
 0x911   :  { %1412 = vst [vmem:[#allocation12] sm:$0xff] %v1407_v19 }
 0x912   :  { %v1409_v7 = vpop.f32.mrf.mxu0 }
 0x913   :  { %1833 = shalt.err (!%p1830_p6)
}
 0x914   :  { %1422 = dma.vmem_to_hbm [thread:$0]  %s1420_s18, 128, %s2366_s6, [#allocation8]   ;;  %v1532_v0 = vpop.f32.mrf.mxu0 }
 0x915   :  { %1846 = dma.done.wait [#allocation8], 128  }
 0x916   :  { %1847 = vsyncadd [#allocation8], 4294967168 }
 0x917   :  { %1426 = vsyncpa [#allocation7], 1 }
 0x918   :  { %1427 = vsyncpa [#allocation10], 1 }
 0x919   :  { %1428 = vsyncpa [#allocation8], 1 }

</bundles_post_ra>
